<compile_context>
chip_gen: v6e
topology: v6e:2x2x1
jax: 0.10.0
libtpu: 0.0.40
codegen_flags: <defaults>
</compile_context>

<pallas_src>
import functools

import jax
import jax.numpy as jnp
from jax.experimental import pallas as pl
from jax.experimental.pallas import tpu as pltpu


def _round_up(x, m):
    return ((x + m - 1) // m) * m


# ---------------------------------------------------------------------------
# Fused kernel: one grid step = (branch b, block of Sb consecutive LSTM time steps).
# ---------------------------------------------------------------------------
def _fused_lstm_kernel(H, Sb,
                       x_ref, wih0_ref, whh0_ref, b0_ref,
                       wih1_ref, whh1_ref, b1_ref, wl_ref, bl_ref,
                       y_ref,
                       h0_ref, c0_ref, h1_ref, c1_ref):
    s = pl.program_id(1)

    # The S axis restarts at 0 for every branch -> reset carried LSTM state.
    @pl.when(s == 0)
    def _():
        h0_ref[...] = jnp.zeros_like(h0_ref)
        c0_ref[...] = jnp.zeros_like(c0_ref)
        h1_ref[...] = jnp.zeros_like(h1_ref)
        c1_ref[...] = jnp.zeros_like(c1_ref)

    # Per-branch weights (loaded once per grid step, reused by the whole inner loop).
    wih0 = wih0_ref[...]       # (F, 4H)
    whh0 = whh0_ref[...]       # (H, 4H)
    b0 = b0_ref[...]           # (1, 4H)
    wih1 = wih1_ref[...]       # (H, 4H)
    whh1 = whh1_ref[...]       # (H, 4H)
    b1 = b1_ref[...]           # (1, 4H)
    wl = wl_ref[...]           # (1, H)
    bl = bl_ref[...]           # (1, 1)

    def cell(x_part, h, c, whh, b):
        # gate columns pre-permuted host-side to [i, f, o, g]:
        # one contiguous sigmoid over 3H lanes + one tanh over H lanes.
        gates = x_part + jnp.dot(h, whh, preferred_element_type=jnp.float32) + b
        sig = jax.nn.sigmoid(gates[:, :3 * H])
        i = sig[:, 0 * H:1 * H]
        f = sig[:, 1 * H:2 * H]
        o = sig[:, 2 * H:3 * H]
        g = jnp.tanh(gates[:, 3 * H:4 * H])
        c_new = f * c + i * g
        h_new = o * jnp.tanh(c_new)
        return h_new, c_new

    def step(j, carry):
        h0, c0, h1, c1 = carry
        xt = x_ref[j]                                                          # (T, F)
        h0, c0 = cell(jnp.dot(xt, wih0, preferred_element_type=jnp.float32),
                      h0, c0, whh0, b0)
        h1, c1 = cell(jnp.dot(h0, wih1, preferred_element_type=jnp.float32),
                      h1, c1, whh1, b1)
        # Linear(H -> 1) on the VPU/XLU + ReLU; row store stays in the VMEM-resident output block.
        out = jnp.sum(h1 * wl, axis=-1, keepdims=True) + bl                    # (T, 1)
        y_ref[j] = jnp.maximum(out, 0.0)
        return (h0, c0, h1, c1)

    carry = (h0_ref[...], c0_ref[...], h1_ref[...], c1_ref[...])
    h0, c0, h1, c1 = jax.lax.fori_loop(0, Sb, step, carry, unroll=8)

    # Persist recurrent state for the next S block of this branch.
    h0_ref[...] = h0
    c0_ref[...] = c0
    h1_ref[...] = h1
    c1_ref[...] = c1


# ---------------------------------------------------------------------------
# Wrapper: stacks the three branches + their weights, runs one pallas_call,
# applies the branch weighting outside (tiny op).
# ---------------------------------------------------------------------------
def lstm_full_forward(x_h, x_d, x_w, p_h, p_d, p_w, W_h, W_d, W_w, hidden_size,
                      seq_block=64):
    B, N, F, T = x_h.shape
    H = hidden_size
    S = B * N

    Sb = min(seq_block, _round_up(S, 8))     # multiple of 8 (sublane tile)
    S_pad = _round_up(S, Sb)
    NS = S_pad // Sb

    def prep_x(x):
        xr = jnp.transpose(x, (0, 1, 3, 2)).reshape(S, T, F).astype(jnp.float32)
        if S_pad != S:
            xr = jnp.pad(xr, ((0, S_pad - S), (0, 0), (0, 0)))
        return xr

    xs = jnp.stack([prep_x(x_h), prep_x(x_d), prep_x(x_w)], axis=0)            # (3, S_pad, T, F)

    # PyTorch gate order [i, f, g, o] -> [i, f, o, g] so sigmoid covers a contiguous 3H slice.
    perm = jnp.array([0, 1, 3, 2])

    def permute_gates(w):                                                      # (..., 4H)
        shp = w.shape
        wr = w.reshape(shp[:-1] + (4, H))
        wr = jnp.take(wr, perm, axis=-2)
        return wr.reshape(shp)

    def prep_params(p):
        wih0 = permute_gates(p["w_ih0"].T)                                     # (F, 4H)
        whh0 = permute_gates(p["w_hh0"].T)                                     # (H, 4H)
        b0 = permute_gates((p["b_ih0"] + p["b_hh0"]).reshape(1, 4 * H))        # (1, 4H)
        wih1 = permute_gates(p["w_ih1"].T)                                     # (H, 4H)
        whh1 = permute_gates(p["w_hh1"].T)                                     # (H, 4H)
        b1 = permute_gates((p["b_ih1"] + p["b_hh1"]).reshape(1, 4 * H))        # (1, 4H)
        wl = p["w_lin"].reshape(1, H)                                          # (1, H)
        bl = p["b_lin"].reshape(1, 1)                                          # (1, 1)
        return wih0, whh0, b0, wih1, whh1, b1, wl, bl

    packs = [prep_params(p) for p in (p_h, p_d, p_w)]
    Wih0, Whh0, B0, Wih1, Whh1, B1, WL, BL = (
        jnp.stack([pk[i] for pk in packs], axis=0).astype(jnp.float32) for i in range(8))

    def branch_spec(shape):
        # Per-branch constant block, selected by the branch grid index only.
        return pl.BlockSpec((None,) + shape, lambda b, s: (b,) + (0,) * len(shape))

    kernel = functools.partial(_fused_lstm_kernel, H, Sb)

    y = pl.pallas_call(
        kernel,
        out_shape=jax.ShapeDtypeStruct((3, S_pad, T, 1), jnp.float32),
        grid_spec=pltpu.PrefetchScalarGridSpec(
            num_scalar_prefetch=0,
            grid=(3, NS),
            in_specs=[
                pl.BlockSpec((None, Sb, T, F), lambda b, s: (b, s, 0, 0)),     # x block
                branch_spec((F, 4 * H)),                                       # W_ih layer0^T
                branch_spec((H, 4 * H)),                                       # W_hh layer0^T
                branch_spec((1, 4 * H)),                                       # b layer0
                branch_spec((H, 4 * H)),                                       # W_ih layer1^T
                branch_spec((H, 4 * H)),                                       # W_hh layer1^T
                branch_spec((1, 4 * H)),                                       # b layer1
                branch_spec((1, H)),                                           # W_lin row
                branch_spec((1, 1)),                                           # b_lin
            ],
            out_specs=pl.BlockSpec((None, Sb, T, 1), lambda b, s: (b, s, 0, 0)),
            scratch_shapes=[pltpu.VMEM((T, H), jnp.float32)] * 4,              # h0, c0, h1, c1
        ),
        compiler_params=pltpu.CompilerParams(
            dimension_semantics=("parallel", "arbitrary")),                    # branches parallel, S recurrent
    )(xs, Wih0, Whh0, B0, Wih1, Whh1, B1, WL, BL)

    y = y[:, :S, :, 0].reshape(3, B, N, T)
    # W_h/W_d/W_w have shape (output_size,) == (1,): broadcast weighted sum (same as the PyTorch module).
    return W_h * y[0] + W_d * y[1] + W_w * y[2]


# ---------------------------------------------------------------------------
# Pure-JAX reference (lax.scan) for verification.
# ---------------------------------------------------------------------------
def _lstm_submodule_ref(x, params, H):
    B, N, F, T = x.shape
    xr = jnp.transpose(x, (0, 1, 3, 2)).reshape(B * N, T, F).astype(jnp.float32)

    def run_layer(w_ih, w_hh, b_ih, b_hh, seq):
        def step(carry, xt):
            h, c = carry
            gates = xt @ w_ih.T + h @ w_hh.T + b_ih + b_hh
            i, f, g, o = jnp.split(gates, 4, axis=-1)
            i = jax.nn.sigmoid(i)
            f = jax.nn.sigmoid(f)
            g = jnp.tanh(g)
            o = jax.nn.sigmoid(o)
            c = f * c + i * g
            h = o * jnp.tanh(c)
            return (h, c), h

        Tb = seq.shape[1]
        init = (jnp.zeros((Tb, H), jnp.float32), jnp.zeros((Tb, H), jnp.float32))
        _, hs = jax.lax.scan(step, init, seq)
        return hs

    h0 = run_layer(params["w_ih0"], params["w_hh0"], params["b_ih0"], params["b_hh0"], xr)
    h1 = run_layer(params["w_ih1"], params["w_hh1"], params["b_ih1"], params["b_hh1"], h0)
    out = jnp.maximum(h1 @ params["w_lin"].T + params["b_lin"], 0.0)
    return out.reshape(B, N, T)


def _lstm_full_ref(x_h, x_d, x_w, p_h, p_d, p_w, W_h, W_d, W_w, H):
    return (W_h * _lstm_submodule_ref(x_h, p_h, H)
            + W_d * _lstm_submodule_ref(x_d, p_d, H)
            + W_w * _lstm_submodule_ref(x_w, p_w, H))


# ---------------------------------------------------------------------------
# Deterministic parameter construction (matches PyTorch module shapes).
# ---------------------------------------------------------------------------
def make_submodule_params(key, input_size, hidden_size, output_size):
    H = hidden_size
    k = 1.0 / jnp.sqrt(jnp.float32(H))
    keys = jax.random.split(key, 10)
    u = lambda kk, shape: jax.random.uniform(kk, shape, jnp.float32, -k, k)
    return {
        "w_ih0": u(keys[0], (4 * H, input_size)),
        "w_hh0": u(keys[1], (4 * H, H)),
        "b_ih0": u(keys[2], (4 * H,)),
        "b_hh0": u(keys[3], (4 * H,)),
        "w_ih1": u(keys[4], (4 * H, H)),
        "w_hh1": u(keys[5], (4 * H, H)),
        "b_ih1": u(keys[6], (4 * H,)),
        "b_hh1": u(keys[7], (4 * H,)),
        "w_lin": u(keys[8], (output_size, H)),
        "b_lin": u(keys[9], (output_size,)),
    }


if __name__ == "__main__":
    # Small shapes consistent with the module: (B, N_nodes, F_in, T_in)
    B, N, F_in, T_in = 2, 4, 4, 8
    hidden_size, output_size = 32, 1

    root = jax.random.PRNGKey(0)
    k_xh, k_xd, k_xw, k_ph, k_pd, k_pw, k_wh, k_wd, k_ww = jax.random.split(root, 9)

    x_h = jax.random.normal(k_xh, (B, N, F_in, T_in), jnp.float32)
    x_d = jax.random.normal(k_xd, (B, N, F_in, T_in), jnp.float32)
    x_w = jax.random.normal(k_xw, (B, N, F_in, T_in), jnp.float32)

    p_h = make_submodule_params(k_ph, F_in, hidden_size, output_size)
    p_d = make_submodule_params(k_pd, F_in, hidden_size, output_size)
    p_w = make_submodule_params(k_pw, F_in, hidden_size, output_size)

    # W_h / W_d / W_w ~ nn.init.uniform_ (U[0,1)), shape (output_size,)
    W_h = jax.random.uniform(k_wh, (output_size,), jnp.float32)
    W_d = jax.random.uniform(k_wd, (output_size,), jnp.float32)
    W_w = jax.random.uniform(k_ww, (output_size,), jnp.float32)

    out = lstm_full_forward(x_h, x_d, x_w, p_h, p_d, p_w, W_h, W_d, W_w, hidden_size)
    out = jax.block_until_ready(out)

    ref = _lstm_full_ref(x_h, x_d, x_w, p_h, p_d, p_w, W_h, W_d, W_w, hidden_size)
    ref = jax.block_until_ready(ref)

    assert out.shape == (B, N, T_in), out.shape
    assert jnp.allclose(out, ref, atol=1e-4, rtol=1e-4), float(jnp.max(jnp.abs(out - ref)))
    print("KERNEL_OK")
</pallas_src>

<mosaic_0001>
module attributes {stable_mosaic.version = 11 : i64} {
  func.func @_fused_lstm_kernel(%arg0: i32, %arg1: i32, %arg2: memref<1x8x8x4xf32, #tpu.memory_space<vmem>>, %arg3: memref<1x4x128xf32, #tpu.memory_space<vmem>>, %arg4: memref<1x32x128xf32, #tpu.memory_space<vmem>>, %arg5: memref<1x1x128xf32, #tpu.memory_space<vmem>>, %arg6: memref<1x32x128xf32, #tpu.memory_space<vmem>>, %arg7: memref<1x32x128xf32, #tpu.memory_space<vmem>>, %arg8: memref<1x1x128xf32, #tpu.memory_space<vmem>>, %arg9: memref<1x1x32xf32, #tpu.memory_space<vmem>>, %arg10: memref<1x1x1xf32, #tpu.memory_space<vmem>>, %arg11: memref<1x8x8x1xf32, #tpu.memory_space<vmem>>, %arg12: memref<8x32xf32, #tpu.memory_space<vmem>>, %arg13: memref<8x32xf32, #tpu.memory_space<vmem>>, %arg14: memref<8x32xf32, #tpu.memory_space<vmem>>, %arg15: memref<8x32xf32, #tpu.memory_space<vmem>>) attributes {dimension_semantics = [#tpu.dimension_semantics<parallel>, #tpu.dimension_semantics<arbitrary>], iteration_bounds = array<i64: 3, 1>, scalar_prefetch = 0 : i64, scratch_operands = 4 : i64, tpu.core_type = #tpu.core_type<tc>, window_params = [{transform_indices = @transform_0, window_bounds = array<i64: 1, 8, 8, 4>}, {transform_indices = @transform_1, window_bounds = array<i64: 1, 4, 128>}, {transform_indices = @transform_2, window_bounds = array<i64: 1, 32, 128>}, {transform_indices = @transform_3, window_bounds = array<i64: 1, 1, 128>}, {transform_indices = @transform_4, window_bounds = array<i64: 1, 32, 128>}, {transform_indices = @transform_5, window_bounds = array<i64: 1, 32, 128>}, {transform_indices = @transform_6, window_bounds = array<i64: 1, 1, 128>}, {transform_indices = @transform_7, window_bounds = array<i64: 1, 1, 32>}, {transform_indices = @transform_8, window_bounds = array<i64: 1, 1, 1>}, {transform_indices = @transform_9, window_bounds = array<i64: 1, 8, 8, 1>}]} {
    %c0_i32 = arith.constant 0 : i32
    %0 = arith.cmpi eq, %arg1, %c0_i32 : i32
    %1 = arith.extui %0 : i1 to i32
    %c0_i32_0 = arith.constant 0 : i32
    %2 = arith.cmpi ne, %1, %c0_i32_0 : i32
    scf.if %2 {
      %cst_152 = arith.constant 0.000000e+00 : f32
      %483 = vector.broadcast %cst_152 : f32 to vector<8x32xf32>
      %c0_153 = arith.constant 0 : index
      %c0_154 = arith.constant 0 : index
      %484 = vector.load %arg12[%c0_153, %c0_154] : memref<8x32xf32, #tpu.memory_space<vmem>>, vector<8x32xf32>
      tpu.vector_store %arg12[%c0_153, %c0_154], %483 {strides = array<i32>} : memref<8x32xf32, #tpu.memory_space<vmem>>, vector<8x32xf32>,
      %cst_155 = arith.constant 0.000000e+00 : f32
      %485 = vector.broadcast %cst_155 : f32 to vector<8x32xf32>
      %c0_156 = arith.constant 0 : index
      %c0_157 = arith.constant 0 : index
      %486 = vector.load %arg13[%c0_156, %c0_157] : memref<8x32xf32, #tpu.memory_space<vmem>>, vector<8x32xf32>
      tpu.vector_store %arg13[%c0_156, %c0_157], %485 {strides = array<i32>} : memref<8x32xf32, #tpu.memory_space<vmem>>, vector<8x32xf32>,
      %cst_158 = arith.constant 0.000000e+00 : f32
      %487 = vector.broadcast %cst_158 : f32 to vector<8x32xf32>
      %c0_159 = arith.constant 0 : index
      %c0_160 = arith.constant 0 : index
      %488 = vector.load %arg14[%c0_159, %c0_160] : memref<8x32xf32, #tpu.memory_space<vmem>>, vector<8x32xf32>
      tpu.vector_store %arg14[%c0_159, %c0_160], %487 {strides = array<i32>} : memref<8x32xf32, #tpu.memory_space<vmem>>, vector<8x32xf32>,
      %cst_161 = arith.constant 0.000000e+00 : f32
      %489 = vector.broadcast %cst_161 : f32 to vector<8x32xf32>
      %c0_162 = arith.constant 0 : index
      %c0_163 = arith.constant 0 : index
      %490 = vector.load %arg15[%c0_162, %c0_163] : memref<8x32xf32, #tpu.memory_space<vmem>>, vector<8x32xf32>
      tpu.vector_store %arg15[%c0_162, %c0_163], %489 {strides = array<i32>} : memref<8x32xf32, #tpu.memory_space<vmem>>, vector<8x32xf32>,
    } else {
    }
    %c0 = arith.constant 0 : index
    %c0_1 = arith.constant 0 : index
    %c0_2 = arith.constant 0 : index
    %3 = vector.load %arg3[%c0, %c0_1, %c0_2] : memref<1x4x128xf32, #tpu.memory_space<vmem>>, vector<1x4x128xf32>
    %4 = vector.shape_cast %3 : vector<1x4x128xf32> to vector<4x128xf32>
    %c0_3 = arith.constant 0 : index
    %c0_4 = arith.constant 0 : index
    %c0_5 = arith.constant 0 : index
    %5 = vector.load %arg4[%c0_3, %c0_4, %c0_5] : memref<1x32x128xf32, #tpu.memory_space<vmem>>, vector<1x32x128xf32>
    %6 = vector.shape_cast %5 : vector<1x32x128xf32> to vector<32x128xf32>
    %c0_6 = arith.constant 0 : index
    %c0_7 = arith.constant 0 : index
    %c0_8 = arith.constant 0 : index
    %7 = vector.load %arg5[%c0_6, %c0_7, %c0_8] : memref<1x1x128xf32, #tpu.memory_space<vmem>>, vector<1x1x128xf32>
    %8 = vector.shape_cast %7 : vector<1x1x128xf32> to vector<1x128xf32>
    %c0_9 = arith.constant 0 : index
    %c0_10 = arith.constant 0 : index
    %c0_11 = arith.constant 0 : index
    %9 = vector.load %arg6[%c0_9, %c0_10, %c0_11] : memref<1x32x128xf32, #tpu.memory_space<vmem>>, vector<1x32x128xf32>
    %10 = vector.shape_cast %9 : vector<1x32x128xf32> to vector<32x128xf32>
    %c0_12 = arith.constant 0 : index
    %c0_13 = arith.constant 0 : index
    %c0_14 = arith.constant 0 : index
    %11 = vector.load %arg7[%c0_12, %c0_13, %c0_14] : memref<1x32x128xf32, #tpu.memory_space<vmem>>, vector<1x32x128xf32>
    %12 = vector.shape_cast %11 : vector<1x32x128xf32> to vector<32x128xf32>
    %c0_15 = arith.constant 0 : index
    %c0_16 = arith.constant 0 : index
    %c0_17 = arith.constant 0 : index
    %13 = vector.load %arg8[%c0_15, %c0_16, %c0_17] : memref<1x1x128xf32, #tpu.memory_space<vmem>>, vector<1x1x128xf32>
    %14 = vector.shape_cast %13 : vector<1x1x128xf32> to vector<1x128xf32>
    %c0_18 = arith.constant 0 : index
    %c0_19 = arith.constant 0 : index
    %c0_20 = arith.constant 0 : index
    %15 = vector.load %arg9[%c0_18, %c0_19, %c0_20] : memref<1x1x32xf32, #tpu.memory_space<vmem>>, vector<1x1x32xf32>
    %16 = vector.shape_cast %15 : vector<1x1x32xf32> to vector<1x32xf32>
    %c0_21 = arith.constant 0 : index
    %c0_22 = arith.constant 0 : index
    %c0_23 = arith.constant 0 : index
    %17 = vector.load %arg10[%c0_21, %c0_22, %c0_23] : memref<1x1x1xf32, #tpu.memory_space<vmem>>, vector<1x1x1xf32>
    %18 = vector.shape_cast %17 : vector<1x1x1xf32> to vector<1x1xf32>
    %c0_24 = arith.constant 0 : index
    %c0_25 = arith.constant 0 : index
    %19 = vector.load %arg12[%c0_24, %c0_25] : memref<8x32xf32, #tpu.memory_space<vmem>>, vector<8x32xf32>
    %c0_26 = arith.constant 0 : index
    %c0_27 = arith.constant 0 : index
    %20 = vector.load %arg13[%c0_26, %c0_27] : memref<8x32xf32, #tpu.memory_space<vmem>>, vector<8x32xf32>
    %c0_28 = arith.constant 0 : index
    %c0_29 = arith.constant 0 : index
    %21 = vector.load %arg14[%c0_28, %c0_29] : memref<8x32xf32, #tpu.memory_space<vmem>>, vector<8x32xf32>
    %c0_30 = arith.constant 0 : index
    %c0_31 = arith.constant 0 : index
    %22 = vector.load %arg15[%c0_30, %c0_31] : memref<8x32xf32, #tpu.memory_space<vmem>>, vector<8x32xf32>
    %c0_i32_32 = arith.constant 0 : i32
    %c0_33 = arith.constant 0 : index
    %23 = arith.index_cast %c0_i32_32 : i32 to index
    %c0_34 = arith.constant 0 : index
    %c0_35 = arith.constant 0 : index
    %24 = vector.load %arg2[%c0_33, %23, %c0_34, %c0_35] : memref<1x8x8x4xf32, #tpu.memory_space<vmem>>, vector<1x1x8x4xf32>
    %25 = vector.shape_cast %24 : vector<1x1x8x4xf32> to vector<8x4xf32>
    %cst = arith.constant dense<0.000000e+00> : vector<8x128xf32>
    %26 = tpu.matmul %25, %4, %cst {dimension_numbers = #tpu.dot_dimension_numbers<[1], [0], [0], [1], [0, 0, 1, 1], [], []>} : vector<8x4xf32>, vector<4x128xf32>, vector<8x128xf32> -> vector<8x128xf32>
    %cst_36 = arith.constant dense<0.000000e+00> : vector<8x128xf32>
    %27 = tpu.matmul %19, %6, %cst_36 {dimension_numbers = #tpu.dot_dimension_numbers<[1], [0], [0], [1], [0, 0, 1, 1], [], []>} : vector<8x32xf32>, vector<32x128xf32>, vector<8x128xf32> -> vector<8x128xf32>
    %28 = arith.addf %26, %27 : vector<8x128xf32>
    %29 = vector.broadcast %8 : vector<1x128xf32> to vector<8x128xf32>
    %30 = arith.addf %28, %29 : vector<8x128xf32>
    %31 = vector.extract_strided_slice %30 {offsets = [0, 0], sizes = [8, 96], strides = [1, 1]} : vector<8x128xf32> to vector<8x96xf32>
    %32 = arith.negf %31 : vector<8x96xf32>
    %33 = math.exp %32 : vector<8x96xf32>
    %cst_37 = arith.constant 1.000000e+00 : f32
    %34 = vector.broadcast %cst_37 : f32 to vector<8x96xf32>
    %35 = arith.addf %34, %33 : vector<8x96xf32>
    %36 = arith.divf %34, %35 : vector<8x96xf32>
    %37 = vector.extract_strided_slice %36 {offsets = [0, 0], sizes = [8, 32], strides = [1, 1]} : vector<8x96xf32> to vector<8x32xf32>
    %38 = vector.extract_strided_slice %36 {offsets = [0, 32], sizes = [8, 32], strides = [1, 1]} : vector<8x96xf32> to vector<8x32xf32>
    %39 = vector.extract_strided_slice %36 {offsets = [0, 64], sizes = [8, 32], strides = [1, 1]} : vector<8x96xf32> to vector<8x32xf32>
    %40 = vector.extract_strided_slice %30 {offsets = [0, 96], sizes = [8, 32], strides = [1, 1]} : vector<8x128xf32> to vector<8x32xf32>
    %41 = math.tanh %40 : vector<8x32xf32>
    %42 = arith.mulf %38, %20 : vector<8x32xf32>
    %43 = arith.mulf %37, %41 : vector<8x32xf32>
    %44 = arith.addf %42, %43 : vector<8x32xf32>
    %45 = math.tanh %44 : vector<8x32xf32>
    %46 = arith.mulf %39, %45 : vector<8x32xf32>
    %cst_38 = arith.constant dense<0.000000e+00> : vector<8x128xf32>
    %47 = tpu.matmul %46, %10, %cst_38 {dimension_numbers = #tpu.dot_dimension_numbers<[1], [0], [0], [1], [0, 0, 1, 1], [], []>} : vector<8x32xf32>, vector<32x128xf32>, vector<8x128xf32> -> vector<8x128xf32>
    %cst_39 = arith.constant dense<0.000000e+00> : vector<8x128xf32>
    %48 = tpu.matmul %21, %12, %cst_39 {dimension_numbers = #tpu.dot_dimension_numbers<[1], [0], [0], [1], [0, 0, 1, 1], [], []>} : vector<8x32xf32>, vector<32x128xf32>, vector<8x128xf32> -> vector<8x128xf32>
    %49 = arith.addf %47, %48 : vector<8x128xf32>
    %50 = vector.broadcast %14 : vector<1x128xf32> to vector<8x128xf32>
    %51 = arith.addf %49, %50 : vector<8x128xf32>
    %52 = vector.extract_strided_slice %51 {offsets = [0, 0], sizes = [8, 96], strides = [1, 1]} : vector<8x128xf32> to vector<8x96xf32>
    %53 = arith.negf %52 : vector<8x96xf32>
    %54 = math.exp %53 : vector<8x96xf32>
    %cst_40 = arith.constant 1.000000e+00 : f32
    %55 = vector.broadcast %cst_40 : f32 to vector<8x96xf32>
    %56 = arith.addf %55, %54 : vector<8x96xf32>
    %57 = arith.divf %55, %56 : vector<8x96xf32>
    %58 = vector.extract_strided_slice %57 {offsets = [0, 0], sizes = [8, 32], strides = [1, 1]} : vector<8x96xf32> to vector<8x32xf32>
    %59 = vector.extract_strided_slice %57 {offsets = [0, 32], sizes = [8, 32], strides = [1, 1]} : vector<8x96xf32> to vector<8x32xf32>
    %60 = vector.extract_strided_slice %57 {offsets = [0, 64], sizes = [8, 32], strides = [1, 1]} : vector<8x96xf32> to vector<8x32xf32>
    %61 = vector.extract_strided_slice %51 {offsets = [0, 96], sizes = [8, 32], strides = [1, 1]} : vector<8x128xf32> to vector<8x32xf32>
    %62 = math.tanh %61 : vector<8x32xf32>
    %63 = arith.mulf %59, %22 : vector<8x32xf32>
    %64 = arith.mulf %58, %62 : vector<8x32xf32>
    %65 = arith.addf %63, %64 : vector<8x32xf32>
    %66 = math.tanh %65 : vector<8x32xf32>
    %67 = arith.mulf %60, %66 : vector<8x32xf32>
    %68 = vector.broadcast %16 : vector<1x32xf32> to vector<8x32xf32>
    %69 = arith.mulf %67, %68 : vector<8x32xf32>
    %cst_41 = arith.constant dense<0.000000e+00> : vector<8xf32>
    %70 = vector.multi_reduction <add>, %69, %cst_41 [1] : vector<8x32xf32> to vector<8xf32>
    %71 = vector.shape_cast %70 : vector<8xf32> to vector<8x1xf32>
    %72 = vector.broadcast %18 : vector<1x1xf32> to vector<8x1xf32>
    %73 = arith.addf %71, %72 : vector<8x1xf32>
    %cst_42 = arith.constant 0.000000e+00 : f32
    %74 = vector.broadcast %cst_42 : f32 to vector<8x1xf32>
    %75 = arith.maximumf %73, %74 : vector<8x1xf32>
    %c0_43 = arith.constant 0 : index
    %76 = arith.index_cast %c0_i32_32 : i32 to index
    %c0_44 = arith.constant 0 : index
    %c0_45 = arith.constant 0 : index
    %77 = vector.load %arg11[%c0_43, %76, %c0_44, %c0_45] : memref<1x8x8x1xf32, #tpu.memory_space<vmem>>, vector<1x1x8x1xf32>
    %78 = vector.shape_cast %77 : vector<1x1x8x1xf32> to vector<8x1xf32>
    %79 = vector.shape_cast %75 : vector<8x1xf32> to vector<1x1x8x1xf32>
    tpu.vector_store %arg11[%c0_43, %76, %c0_44, %c0_45], %79 {strides = array<i32>} : memref<1x8x8x1xf32, #tpu.memory_space<vmem>>, vector<1x1x8x1xf32>,
    %c1_i32 = arith.constant 1 : i32
    %c0_46 = arith.constant 0 : index
    %80 = arith.index_cast %c1_i32 : i32 to index
    %c0_47 = arith.constant 0 : index
    %c0_48 = arith.constant 0 : index
    %81 = vector.load %arg2[%c0_46, %80, %c0_47, %c0_48] : memref<1x8x8x4xf32, #tpu.memory_space<vmem>>, vector<1x1x8x4xf32>
    %82 = vector.shape_cast %81 : vector<1x1x8x4xf32> to vector<8x4xf32>
    %cst_49 = arith.constant dense<0.000000e+00> : vector<8x128xf32>
    %83 = tpu.matmul %82, %4, %cst_49 {dimension_numbers = #tpu.dot_dimension_numbers<[1], [0], [0], [1], [0, 0, 1, 1], [], []>} : vector<8x4xf32>, vector<4x128xf32>, vector<8x128xf32> -> vector<8x128xf32>
    %cst_50 = arith.constant dense<0.000000e+00> : vector<8x128xf32>
    %84 = tpu.matmul %46, %6, %cst_50 {dimension_numbers = #tpu.dot_dimension_numbers<[1], [0], [0], [1], [0, 0, 1, 1], [], []>} : vector<8x32xf32>, vector<32x128xf32>, vector<8x128xf32> -> vector<8x128xf32>
    %85 = arith.addf %83, %84 : vector<8x128xf32>
    %86 = vector.broadcast %8 : vector<1x128xf32> to vector<8x128xf32>
    %87 = arith.addf %85, %86 : vector<8x128xf32>
    %88 = vector.extract_strided_slice %87 {offsets = [0, 0], sizes = [8, 96], strides = [1, 1]} : vector<8x128xf32> to vector<8x96xf32>
    %89 = arith.negf %88 : vector<8x96xf32>
    %90 = math.exp %89 : vector<8x96xf32>
    %cst_51 = arith.constant 1.000000e+00 : f32
    %91 = vector.broadcast %cst_51 : f32 to vector<8x96xf32>
    %92 = arith.addf %91, %90 : vector<8x96xf32>
    %93 = arith.divf %91, %92 : vector<8x96xf32>
    %94 = vector.extract_strided_slice %93 {offsets = [0, 0], sizes = [8, 32], strides = [1, 1]} : vector<8x96xf32> to vector<8x32xf32>
    %95 = vector.extract_strided_slice %93 {offsets = [0, 32], sizes = [8, 32], strides = [1, 1]} : vector<8x96xf32> to vector<8x32xf32>
    %96 = vector.extract_strided_slice %93 {offsets = [0, 64], sizes = [8, 32], strides = [1, 1]} : vector<8x96xf32> to vector<8x32xf32>
    %97 = vector.extract_strided_slice %87 {offsets = [0, 96], sizes = [8, 32], strides = [1, 1]} : vector<8x128xf32> to vector<8x32xf32>
    %98 = math.tanh %97 : vector<8x32xf32>
    %99 = arith.mulf %95, %44 : vector<8x32xf32>
    %100 = arith.mulf %94, %98 : vector<8x32xf32>
    %101 = arith.addf %99, %100 : vector<8x32xf32>
    %102 = math.tanh %101 : vector<8x32xf32>
    %103 = arith.mulf %96, %102 : vector<8x32xf32>
    %cst_52 = arith.constant dense<0.000000e+00> : vector<8x128xf32>
    %104 = tpu.matmul %103, %10, %cst_52 {dimension_numbers = #tpu.dot_dimension_numbers<[1], [0], [0], [1], [0, 0, 1, 1], [], []>} : vector<8x32xf32>, vector<32x128xf32>, vector<8x128xf32> -> vector<8x128xf32>
    %cst_53 = arith.constant dense<0.000000e+00> : vector<8x128xf32>
    %105 = tpu.matmul %67, %12, %cst_53 {dimension_numbers = #tpu.dot_dimension_numbers<[1], [0], [0], [1], [0, 0, 1, 1], [], []>} : vector<8x32xf32>, vector<32x128xf32>, vector<8x128xf32> -> vector<8x128xf32>
    %106 = arith.addf %104, %105 : vector<8x128xf32>
    %107 = vector.broadcast %14 : vector<1x128xf32> to vector<8x128xf32>
    %108 = arith.addf %106, %107 : vector<8x128xf32>
    %109 = vector.extract_strided_slice %108 {offsets = [0, 0], sizes = [8, 96], strides = [1, 1]} : vector<8x128xf32> to vector<8x96xf32>
    %110 = arith.negf %109 : vector<8x96xf32>
    %111 = math.exp %110 : vector<8x96xf32>
    %cst_54 = arith.constant 1.000000e+00 : f32
    %112 = vector.broadcast %cst_54 : f32 to vector<8x96xf32>
    %113 = arith.addf %112, %111 : vector<8x96xf32>
    %114 = arith.divf %112, %113 : vector<8x96xf32>
    %115 = vector.extract_strided_slice %114 {offsets = [0, 0], sizes = [8, 32], strides = [1, 1]} : vector<8x96xf32> to vector<8x32xf32>
    %116 = vector.extract_strided_slice %114 {offsets = [0, 32], sizes = [8, 32], strides = [1, 1]} : vector<8x96xf32> to vector<8x32xf32>
    %117 = vector.extract_strided_slice %114 {offsets = [0, 64], sizes = [8, 32], strides = [1, 1]} : vector<8x96xf32> to vector<8x32xf32>
    %118 = vector.extract_strided_slice %108 {offsets = [0, 96], sizes = [8, 32], strides = [1, 1]} : vector<8x128xf32> to vector<8x32xf32>
    %119 = math.tanh %118 : vector<8x32xf32>
    %120 = arith.mulf %116, %65 : vector<8x32xf32>
    %121 = arith.mulf %115, %119 : vector<8x32xf32>
    %122 = arith.addf %120, %121 : vector<8x32xf32>
    %123 = math.tanh %122 : vector<8x32xf32>
    %124 = arith.mulf %117, %123 : vector<8x32xf32>
    %125 = vector.broadcast %16 : vector<1x32xf32> to vector<8x32xf32>
    %126 = arith.mulf %124, %125 : vector<8x32xf32>
    %cst_55 = arith.constant dense<0.000000e+00> : vector<8xf32>
    %127 = vector.multi_reduction <add>, %126, %cst_55 [1] : vector<8x32xf32> to vector<8xf32>
    %128 = vector.shape_cast %127 : vector<8xf32> to vector<8x1xf32>
    %129 = vector.broadcast %18 : vector<1x1xf32> to vector<8x1xf32>
    %130 = arith.addf %128, %129 : vector<8x1xf32>
    %cst_56 = arith.constant 0.000000e+00 : f32
    %131 = vector.broadcast %cst_56 : f32 to vector<8x1xf32>
    %132 = arith.maximumf %130, %131 : vector<8x1xf32>
    %c0_57 = arith.constant 0 : index
    %133 = arith.index_cast %c1_i32 : i32 to index
    %c0_58 = arith.constant 0 : index
    %c0_59 = arith.constant 0 : index
    %134 = vector.load %arg11[%c0_57, %133, %c0_58, %c0_59] : memref<1x8x8x1xf32, #tpu.memory_space<vmem>>, vector<1x1x8x1xf32>
    %135 = vector.shape_cast %134 : vector<1x1x8x1xf32> to vector<8x1xf32>
    %136 = vector.shape_cast %132 : vector<8x1xf32> to vector<1x1x8x1xf32>
    tpu.vector_store %arg11[%c0_57, %133, %c0_58, %c0_59], %136 {strides = array<i32>} : memref<1x8x8x1xf32, #tpu.memory_space<vmem>>, vector<1x1x8x1xf32>,
    %c2_i32 = arith.constant 2 : i32
    %c0_60 = arith.constant 0 : index
    %137 = arith.index_cast %c2_i32 : i32 to index
    %c0_61 = arith.constant 0 : index
    %c0_62 = arith.constant 0 : index
    %138 = vector.load %arg2[%c0_60, %137, %c0_61, %c0_62] : memref<1x8x8x4xf32, #tpu.memory_space<vmem>>, vector<1x1x8x4xf32>
    %139 = vector.shape_cast %138 : vector<1x1x8x4xf32> to vector<8x4xf32>
    %cst_63 = arith.constant dense<0.000000e+00> : vector<8x128xf32>
    %140 = tpu.matmul %139, %4, %cst_63 {dimension_numbers = #tpu.dot_dimension_numbers<[1], [0], [0], [1], [0, 0, 1, 1], [], []>} : vector<8x4xf32>, vector<4x128xf32>, vector<8x128xf32> -> vector<8x128xf32>
    %cst_64 = arith.constant dense<0.000000e+00> : vector<8x128xf32>
    %141 = tpu.matmul %103, %6, %cst_64 {dimension_numbers = #tpu.dot_dimension_numbers<[1], [0], [0], [1], [0, 0, 1, 1], [], []>} : vector<8x32xf32>, vector<32x128xf32>, vector<8x128xf32> -> vector<8x128xf32>
    %142 = arith.addf %140, %141 : vector<8x128xf32>
    %143 = vector.broadcast %8 : vector<1x128xf32> to vector<8x128xf32>
    %144 = arith.addf %142, %143 : vector<8x128xf32>
    %145 = vector.extract_strided_slice %144 {offsets = [0, 0], sizes = [8, 96], strides = [1, 1]} : vector<8x128xf32> to vector<8x96xf32>
    %146 = arith.negf %145 : vector<8x96xf32>
    %147 = math.exp %146 : vector<8x96xf32>
    %cst_65 = arith.constant 1.000000e+00 : f32
    %148 = vector.broadcast %cst_65 : f32 to vector<8x96xf32>
    %149 = arith.addf %148, %147 : vector<8x96xf32>
    %150 = arith.divf %148, %149 : vector<8x96xf32>
    %151 = vector.extract_strided_slice %150 {offsets = [0, 0], sizes = [8, 32], strides = [1, 1]} : vector<8x96xf32> to vector<8x32xf32>
    %152 = vector.extract_strided_slice %150 {offsets = [0, 32], sizes = [8, 32], strides = [1, 1]} : vector<8x96xf32> to vector<8x32xf32>
    %153 = vector.extract_strided_slice %150 {offsets = [0, 64], sizes = [8, 32], strides = [1, 1]} : vector<8x96xf32> to vector<8x32xf32>
    %154 = vector.extract_strided_slice %144 {offsets = [0, 96], sizes = [8, 32], strides = [1, 1]} : vector<8x128xf32> to vector<8x32xf32>
    %155 = math.tanh %154 : vector<8x32xf32>
    %156 = arith.mulf %152, %101 : vector<8x32xf32>
    %157 = arith.mulf %151, %155 : vector<8x32xf32>
    %158 = arith.addf %156, %157 : vector<8x32xf32>
    %159 = math.tanh %158 : vector<8x32xf32>
    %160 = arith.mulf %153, %159 : vector<8x32xf32>
    %cst_66 = arith.constant dense<0.000000e+00> : vector<8x128xf32>
    %161 = tpu.matmul %160, %10, %cst_66 {dimension_numbers = #tpu.dot_dimension_numbers<[1], [0], [0], [1], [0, 0, 1, 1], [], []>} : vector<8x32xf32>, vector<32x128xf32>, vector<8x128xf32> -> vector<8x128xf32>
    %cst_67 = arith.constant dense<0.000000e+00> : vector<8x128xf32>
    %162 = tpu.matmul %124, %12, %cst_67 {dimension_numbers = #tpu.dot_dimension_numbers<[1], [0], [0], [1], [0, 0, 1, 1], [], []>} : vector<8x32xf32>, vector<32x128xf32>, vector<8x128xf32> -> vector<8x128xf32>
    %163 = arith.addf %161, %162 : vector<8x128xf32>
    %164 = vector.broadcast %14 : vector<1x128xf32> to vector<8x128xf32>
    %165 = arith.addf %163, %164 : vector<8x128xf32>
    %166 = vector.extract_strided_slice %165 {offsets = [0, 0], sizes = [8, 96], strides = [1, 1]} : vector<8x128xf32> to vector<8x96xf32>
    %167 = arith.negf %166 : vector<8x96xf32>
    %168 = math.exp %167 : vector<8x96xf32>
    %cst_68 = arith.constant 1.000000e+00 : f32
    %169 = vector.broadcast %cst_68 : f32 to vector<8x96xf32>
    %170 = arith.addf %169, %168 : vector<8x96xf32>
    %171 = arith.divf %169, %170 : vector<8x96xf32>
    %172 = vector.extract_strided_slice %171 {offsets = [0, 0], sizes = [8, 32], strides = [1, 1]} : vector<8x96xf32> to vector<8x32xf32>
    %173 = vector.extract_strided_slice %171 {offsets = [0, 32], sizes = [8, 32], strides = [1, 1]} : vector<8x96xf32> to vector<8x32xf32>
    %174 = vector.extract_strided_slice %171 {offsets = [0, 64], sizes = [8, 32], strides = [1, 1]} : vector<8x96xf32> to vector<8x32xf32>
    %175 = vector.extract_strided_slice %165 {offsets = [0, 96], sizes = [8, 32], strides = [1, 1]} : vector<8x128xf32> to vector<8x32xf32>
    %176 = math.tanh %175 : vector<8x32xf32>
    %177 = arith.mulf %173, %122 : vector<8x32xf32>
    %178 = arith.mulf %172, %176 : vector<8x32xf32>
    %179 = arith.addf %177, %178 : vector<8x32xf32>
    %180 = math.tanh %179 : vector<8x32xf32>
    %181 = arith.mulf %174, %180 : vector<8x32xf32>
    %182 = vector.broadcast %16 : vector<1x32xf32> to vector<8x32xf32>
    %183 = arith.mulf %181, %182 : vector<8x32xf32>
    %cst_69 = arith.constant dense<0.000000e+00> : vector<8xf32>
    %184 = vector.multi_reduction <add>, %183, %cst_69 [1] : vector<8x32xf32> to vector<8xf32>
    %185 = vector.shape_cast %184 : vector<8xf32> to vector<8x1xf32>
    %186 = vector.broadcast %18 : vector<1x1xf32> to vector<8x1xf32>
    %187 = arith.addf %185, %186 : vector<8x1xf32>
    %cst_70 = arith.constant 0.000000e+00 : f32
    %188 = vector.broadcast %cst_70 : f32 to vector<8x1xf32>
    %189 = arith.maximumf %187, %188 : vector<8x1xf32>
    %c0_71 = arith.constant 0 : index
    %190 = arith.index_cast %c2_i32 : i32 to index
    %c0_72 = arith.constant 0 : index
    %c0_73 = arith.constant 0 : index
    %191 = vector.load %arg11[%c0_71, %190, %c0_72, %c0_73] : memref<1x8x8x1xf32, #tpu.memory_space<vmem>>, vector<1x1x8x1xf32>
    %192 = vector.shape_cast %191 : vector<1x1x8x1xf32> to vector<8x1xf32>
    %193 = vector.shape_cast %189 : vector<8x1xf32> to vector<1x1x8x1xf32>
    tpu.vector_store %arg11[%c0_71, %190, %c0_72, %c0_73], %193 {strides = array<i32>} : memref<1x8x8x1xf32, #tpu.memory_space<vmem>>, vector<1x1x8x1xf32>,
    %c3_i32 = arith.constant 3 : i32
    %c0_74 = arith.constant 0 : index
    %194 = arith.index_cast %c3_i32 : i32 to index
    %c0_75 = arith.constant 0 : index
    %c0_76 = arith.constant 0 : index
    %195 = vector.load %arg2[%c0_74, %194, %c0_75, %c0_76] : memref<1x8x8x4xf32, #tpu.memory_space<vmem>>, vector<1x1x8x4xf32>
    %196 = vector.shape_cast %195 : vector<1x1x8x4xf32> to vector<8x4xf32>
    %cst_77 = arith.constant dense<0.000000e+00> : vector<8x128xf32>
    %197 = tpu.matmul %196, %4, %cst_77 {dimension_numbers = #tpu.dot_dimension_numbers<[1], [0], [0], [1], [0, 0, 1, 1], [], []>} : vector<8x4xf32>, vector<4x128xf32>, vector<8x128xf32> -> vector<8x128xf32>
    %cst_78 = arith.constant dense<0.000000e+00> : vector<8x128xf32>
    %198 = tpu.matmul %160, %6, %cst_78 {dimension_numbers = #tpu.dot_dimension_numbers<[1], [0], [0], [1], [0, 0, 1, 1], [], []>} : vector<8x32xf32>, vector<32x128xf32>, vector<8x128xf32> -> vector<8x128xf32>
    %199 = arith.addf %197, %198 : vector<8x128xf32>
    %200 = vector.broadcast %8 : vector<1x128xf32> to vector<8x128xf32>
    %201 = arith.addf %199, %200 : vector<8x128xf32>
    %202 = vector.extract_strided_slice %201 {offsets = [0, 0], sizes = [8, 96], strides = [1, 1]} : vector<8x128xf32> to vector<8x96xf32>
    %203 = arith.negf %202 : vector<8x96xf32>
    %204 = math.exp %203 : vector<8x96xf32>
    %cst_79 = arith.constant 1.000000e+00 : f32
    %205 = vector.broadcast %cst_79 : f32 to vector<8x96xf32>
    %206 = arith.addf %205, %204 : vector<8x96xf32>
    %207 = arith.divf %205, %206 : vector<8x96xf32>
    %208 = vector.extract_strided_slice %207 {offsets = [0, 0], sizes = [8, 32], strides = [1, 1]} : vector<8x96xf32> to vector<8x32xf32>
    %209 = vector.extract_strided_slice %207 {offsets = [0, 32], sizes = [8, 32], strides = [1, 1]} : vector<8x96xf32> to vector<8x32xf32>
    %210 = vector.extract_strided_slice %207 {offsets = [0, 64], sizes = [8, 32], strides = [1, 1]} : vector<8x96xf32> to vector<8x32xf32>
    %211 = vector.extract_strided_slice %201 {offsets = [0, 96], sizes = [8, 32], strides = [1, 1]} : vector<8x128xf32> to vector<8x32xf32>
    %212 = math.tanh %211 : vector<8x32xf32>
    %213 = arith.mulf %209, %158 : vector<8x32xf32>
    %214 = arith.mulf %208, %212 : vector<8x32xf32>
    %215 = arith.addf %213, %214 : vector<8x32xf32>
    %216 = math.tanh %215 : vector<8x32xf32>
    %217 = arith.mulf %210, %216 : vector<8x32xf32>
    %cst_80 = arith.constant dense<0.000000e+00> : vector<8x128xf32>
    %218 = tpu.matmul %217, %10, %cst_80 {dimension_numbers = #tpu.dot_dimension_numbers<[1], [0], [0], [1], [0, 0, 1, 1], [], []>} : vector<8x32xf32>, vector<32x128xf32>, vector<8x128xf32> -> vector<8x128xf32>
    %cst_81 = arith.constant dense<0.000000e+00> : vector<8x128xf32>
    %219 = tpu.matmul %181, %12, %cst_81 {dimension_numbers = #tpu.dot_dimension_numbers<[1], [0], [0], [1], [0, 0, 1, 1], [], []>} : vector<8x32xf32>, vector<32x128xf32>, vector<8x128xf32> -> vector<8x128xf32>
    %220 = arith.addf %218, %219 : vector<8x128xf32>
    %221 = vector.broadcast %14 : vector<1x128xf32> to vector<8x128xf32>
    %222 = arith.addf %220, %221 : vector<8x128xf32>
    %223 = vector.extract_strided_slice %222 {offsets = [0, 0], sizes = [8, 96], strides = [1, 1]} : vector<8x128xf32> to vector<8x96xf32>
    %224 = arith.negf %223 : vector<8x96xf32>
    %225 = math.exp %224 : vector<8x96xf32>
    %cst_82 = arith.constant 1.000000e+00 : f32
    %226 = vector.broadcast %cst_82 : f32 to vector<8x96xf32>
    %227 = arith.addf %226, %225 : vector<8x96xf32>
    %228 = arith.divf %226, %227 : vector<8x96xf32>
    %229 = vector.extract_strided_slice %228 {offsets = [0, 0], sizes = [8, 32], strides = [1, 1]} : vector<8x96xf32> to vector<8x32xf32>
    %230 = vector.extract_strided_slice %228 {offsets = [0, 32], sizes = [8, 32], strides = [1, 1]} : vector<8x96xf32> to vector<8x32xf32>
    %231 = vector.extract_strided_slice %228 {offsets = [0, 64], sizes = [8, 32], strides = [1, 1]} : vector<8x96xf32> to vector<8x32xf32>
    %232 = vector.extract_strided_slice %222 {offsets = [0, 96], sizes = [8, 32], strides = [1, 1]} : vector<8x128xf32> to vector<8x32xf32>
    %233 = math.tanh %232 : vector<8x32xf32>
    %234 = arith.mulf %230, %179 : vector<8x32xf32>
    %235 = arith.mulf %229, %233 : vector<8x32xf32>
    %236 = arith.addf %234, %235 : vector<8x32xf32>
    %237 = math.tanh %236 : vector<8x32xf32>
    %238 = arith.mulf %231, %237 : vector<8x32xf32>
    %239 = vector.broadcast %16 : vector<1x32xf32> to vector<8x32xf32>
    %240 = arith.mulf %238, %239 : vector<8x32xf32>
    %cst_83 = arith.constant dense<0.000000e+00> : vector<8xf32>
    %241 = vector.multi_reduction <add>, %240, %cst_83 [1] : vector<8x32xf32> to vector<8xf32>
    %242 = vector.shape_cast %241 : vector<8xf32> to vector<8x1xf32>
    %243 = vector.broadcast %18 : vector<1x1xf32> to vector<8x1xf32>
    %244 = arith.addf %242, %243 : vector<8x1xf32>
    %cst_84 = arith.constant 0.000000e+00 : f32
    %245 = vector.broadcast %cst_84 : f32 to vector<8x1xf32>
    %246 = arith.maximumf %244, %245 : vector<8x1xf32>
    %c0_85 = arith.constant 0 : index
    %247 = arith.index_cast %c3_i32 : i32 to index
    %c0_86 = arith.constant 0 : index
    %c0_87 = arith.constant 0 : index
    %248 = vector.load %arg11[%c0_85, %247, %c0_86, %c0_87] : memref<1x8x8x1xf32, #tpu.memory_space<vmem>>, vector<1x1x8x1xf32>
    %249 = vector.shape_cast %248 : vector<1x1x8x1xf32> to vector<8x1xf32>
    %250 = vector.shape_cast %246 : vector<8x1xf32> to vector<1x1x8x1xf32>
    tpu.vector_store %arg11[%c0_85, %247, %c0_86, %c0_87], %250 {strides = array<i32>} : memref<1x8x8x1xf32, #tpu.memory_space<vmem>>, vector<1x1x8x1xf32>,
    %c4_i32 = arith.constant 4 : i32
    %c0_88 = arith.constant 0 : index
    %251 = arith.index_cast %c4_i32 : i32 to index
    %c0_89 = arith.constant 0 : index
    %c0_90 = arith.constant 0 : index
    %252 = vector.load %arg2[%c0_88, %251, %c0_89, %c0_90] : memref<1x8x8x4xf32, #tpu.memory_space<vmem>>, vector<1x1x8x4xf32>
    %253 = vector.shape_cast %252 : vector<1x1x8x4xf32> to vector<8x4xf32>
    %cst_91 = arith.constant dense<0.000000e+00> : vector<8x128xf32>
    %254 = tpu.matmul %253, %4, %cst_91 {dimension_numbers = #tpu.dot_dimension_numbers<[1], [0], [0], [1], [0, 0, 1, 1], [], []>} : vector<8x4xf32>, vector<4x128xf32>, vector<8x128xf32> -> vector<8x128xf32>
    %cst_92 = arith.constant dense<0.000000e+00> : vector<8x128xf32>
    %255 = tpu.matmul %217, %6, %cst_92 {dimension_numbers = #tpu.dot_dimension_numbers<[1], [0], [0], [1], [0, 0, 1, 1], [], []>} : vector<8x32xf32>, vector<32x128xf32>, vector<8x128xf32> -> vector<8x128xf32>
    %256 = arith.addf %254, %255 : vector<8x128xf32>
    %257 = vector.broadcast %8 : vector<1x128xf32> to vector<8x128xf32>
    %258 = arith.addf %256, %257 : vector<8x128xf32>
    %259 = vector.extract_strided_slice %258 {offsets = [0, 0], sizes = [8, 96], strides = [1, 1]} : vector<8x128xf32> to vector<8x96xf32>
    %260 = arith.negf %259 : vector<8x96xf32>
    %261 = math.exp %260 : vector<8x96xf32>
    %cst_93 = arith.constant 1.000000e+00 : f32
    %262 = vector.broadcast %cst_93 : f32 to vector<8x96xf32>
    %263 = arith.addf %262, %261 : vector<8x96xf32>
    %264 = arith.divf %262, %263 : vector<8x96xf32>
    %265 = vector.extract_strided_slice %264 {offsets = [0, 0], sizes = [8, 32], strides = [1, 1]} : vector<8x96xf32> to vector<8x32xf32>
    %266 = vector.extract_strided_slice %264 {offsets = [0, 32], sizes = [8, 32], strides = [1, 1]} : vector<8x96xf32> to vector<8x32xf32>
    %267 = vector.extract_strided_slice %264 {offsets = [0, 64], sizes = [8, 32], strides = [1, 1]} : vector<8x96xf32> to vector<8x32xf32>
    %268 = vector.extract_strided_slice %258 {offsets = [0, 96], sizes = [8, 32], strides = [1, 1]} : vector<8x128xf32> to vector<8x32xf32>
    %269 = math.tanh %268 : vector<8x32xf32>
    %270 = arith.mulf %266, %215 : vector<8x32xf32>
    %271 = arith.mulf %265, %269 : vector<8x32xf32>
    %272 = arith.addf %270, %271 : vector<8x32xf32>
    %273 = math.tanh %272 : vector<8x32xf32>
    %274 = arith.mulf %267, %273 : vector<8x32xf32>
    %cst_94 = arith.constant dense<0.000000e+00> : vector<8x128xf32>
    %275 = tpu.matmul %274, %10, %cst_94 {dimension_numbers = #tpu.dot_dimension_numbers<[1], [0], [0], [1], [0, 0, 1, 1], [], []>} : vector<8x32xf32>, vector<32x128xf32>, vector<8x128xf32> -> vector<8x128xf32>
    %cst_95 = arith.constant dense<0.000000e+00> : vector<8x128xf32>
    %276 = tpu.matmul %238, %12, %cst_95 {dimension_numbers = #tpu.dot_dimension_numbers<[1], [0], [0], [1], [0, 0, 1, 1], [], []>} : vector<8x32xf32>, vector<32x128xf32>, vector<8x128xf32> -> vector<8x128xf32>
    %277 = arith.addf %275, %276 : vector<8x128xf32>
    %278 = vector.broadcast %14 : vector<1x128xf32> to vector<8x128xf32>
    %279 = arith.addf %277, %278 : vector<8x128xf32>
    %280 = vector.extract_strided_slice %279 {offsets = [0, 0], sizes = [8, 96], strides = [1, 1]} : vector<8x128xf32> to vector<8x96xf32>
    %281 = arith.negf %280 : vector<8x96xf32>
    %282 = math.exp %281 : vector<8x96xf32>
    %cst_96 = arith.constant 1.000000e+00 : f32
    %283 = vector.broadcast %cst_96 : f32 to vector<8x96xf32>
    %284 = arith.addf %283, %282 : vector<8x96xf32>
    %285 = arith.divf %283, %284 : vector<8x96xf32>
    %286 = vector.extract_strided_slice %285 {offsets = [0, 0], sizes = [8, 32], strides = [1, 1]} : vector<8x96xf32> to vector<8x32xf32>
    %287 = vector.extract_strided_slice %285 {offsets = [0, 32], sizes = [8, 32], strides = [1, 1]} : vector<8x96xf32> to vector<8x32xf32>
    %288 = vector.extract_strided_slice %285 {offsets = [0, 64], sizes = [8, 32], strides = [1, 1]} : vector<8x96xf32> to vector<8x32xf32>
    %289 = vector.extract_strided_slice %279 {offsets = [0, 96], sizes = [8, 32], strides = [1, 1]} : vector<8x128xf32> to vector<8x32xf32>
    %290 = math.tanh %289 : vector<8x32xf32>
    %291 = arith.mulf %287, %236 : vector<8x32xf32>
    %292 = arith.mulf %286, %290 : vector<8x32xf32>
    %293 = arith.addf %291, %292 : vector<8x32xf32>
    %294 = math.tanh %293 : vector<8x32xf32>
    %295 = arith.mulf %288, %294 : vector<8x32xf32>
    %296 = vector.broadcast %16 : vector<1x32xf32> to vector<8x32xf32>
    %297 = arith.mulf %295, %296 : vector<8x32xf32>
    %cst_97 = arith.constant dense<0.000000e+00> : vector<8xf32>
    %298 = vector.multi_reduction <add>, %297, %cst_97 [1] : vector<8x32xf32> to vector<8xf32>
    %299 = vector.shape_cast %298 : vector<8xf32> to vector<8x1xf32>
    %300 = vector.broadcast %18 : vector<1x1xf32> to vector<8x1xf32>
    %301 = arith.addf %299, %300 : vector<8x1xf32>
    %cst_98 = arith.constant 0.000000e+00 : f32
    %302 = vector.broadcast %cst_98 : f32 to vector<8x1xf32>
    %303 = arith.maximumf %301, %302 : vector<8x1xf32>
    %c0_99 = arith.constant 0 : index
    %304 = arith.index_cast %c4_i32 : i32 to index
    %c0_100 = arith.constant 0 : index
    %c0_101 = arith.constant 0 : index
    %305 = vector.load %arg11[%c0_99, %304, %c0_100, %c0_101] : memref<1x8x8x1xf32, #tpu.memory_space<vmem>>, vector<1x1x8x1xf32>
    %306 = vector.shape_cast %305 : vector<1x1x8x1xf32> to vector<8x1xf32>
    %307 = vector.shape_cast %303 : vector<8x1xf32> to vector<1x1x8x1xf32>
    tpu.vector_store %arg11[%c0_99, %304, %c0_100, %c0_101], %307 {strides = array<i32>} : memref<1x8x8x1xf32, #tpu.memory_space<vmem>>, vector<1x1x8x1xf32>,
    %c5_i32 = arith.constant 5 : i32
    %c0_102 = arith.constant 0 : index
    %308 = arith.index_cast %c5_i32 : i32 to index
    %c0_103 = arith.constant 0 : index
    %c0_104 = arith.constant 0 : index
    %309 = vector.load %arg2[%c0_102, %308, %c0_103, %c0_104] : memref<1x8x8x4xf32, #tpu.memory_space<vmem>>, vector<1x1x8x4xf32>
    %310 = vector.shape_cast %309 : vector<1x1x8x4xf32> to vector<8x4xf32>
    %cst_105 = arith.constant dense<0.000000e+00> : vector<8x128xf32>
    %311 = tpu.matmul %310, %4, %cst_105 {dimension_numbers = #tpu.dot_dimension_numbers<[1], [0], [0], [1], [0, 0, 1, 1], [], []>} : vector<8x4xf32>, vector<4x128xf32>, vector<8x128xf32> -> vector<8x128xf32>
    %cst_106 = arith.constant dense<0.000000e+00> : vector<8x128xf32>
    %312 = tpu.matmul %274, %6, %cst_106 {dimension_numbers = #tpu.dot_dimension_numbers<[1], [0], [0], [1], [0, 0, 1, 1], [], []>} : vector<8x32xf32>, vector<32x128xf32>, vector<8x128xf32> -> vector<8x128xf32>
    %313 = arith.addf %311, %312 : vector<8x128xf32>
    %314 = vector.broadcast %8 : vector<1x128xf32> to vector<8x128xf32>
    %315 = arith.addf %313, %314 : vector<8x128xf32>
    %316 = vector.extract_strided_slice %315 {offsets = [0, 0], sizes = [8, 96], strides = [1, 1]} : vector<8x128xf32> to vector<8x96xf32>
    %317 = arith.negf %316 : vector<8x96xf32>
    %318 = math.exp %317 : vector<8x96xf32>
    %cst_107 = arith.constant 1.000000e+00 : f32
    %319 = vector.broadcast %cst_107 : f32 to vector<8x96xf32>
    %320 = arith.addf %319, %318 : vector<8x96xf32>
    %321 = arith.divf %319, %320 : vector<8x96xf32>
    %322 = vector.extract_strided_slice %321 {offsets = [0, 0], sizes = [8, 32], strides = [1, 1]} : vector<8x96xf32> to vector<8x32xf32>
    %323 = vector.extract_strided_slice %321 {offsets = [0, 32], sizes = [8, 32], strides = [1, 1]} : vector<8x96xf32> to vector<8x32xf32>
    %324 = vector.extract_strided_slice %321 {offsets = [0, 64], sizes = [8, 32], strides = [1, 1]} : vector<8x96xf32> to vector<8x32xf32>
    %325 = vector.extract_strided_slice %315 {offsets = [0, 96], sizes = [8, 32], strides = [1, 1]} : vector<8x128xf32> to vector<8x32xf32>
    %326 = math.tanh %325 : vector<8x32xf32>
    %327 = arith.mulf %323, %272 : vector<8x32xf32>
    %328 = arith.mulf %322, %326 : vector<8x32xf32>
    %329 = arith.addf %327, %328 : vector<8x32xf32>
    %330 = math.tanh %329 : vector<8x32xf32>
    %331 = arith.mulf %324, %330 : vector<8x32xf32>
    %cst_108 = arith.constant dense<0.000000e+00> : vector<8x128xf32>
    %332 = tpu.matmul %331, %10, %cst_108 {dimension_numbers = #tpu.dot_dimension_numbers<[1], [0], [0], [1], [0, 0, 1, 1], [], []>} : vector<8x32xf32>, vector<32x128xf32>, vector<8x128xf32> -> vector<8x128xf32>
    %cst_109 = arith.constant dense<0.000000e+00> : vector<8x128xf32>
    %333 = tpu.matmul %295, %12, %cst_109 {dimension_numbers = #tpu.dot_dimension_numbers<[1], [0], [0], [1], [0, 0, 1, 1], [], []>} : vector<8x32xf32>, vector<32x128xf32>, vector<8x128xf32> -> vector<8x128xf32>
    %334 = arith.addf %332, %333 : vector<8x128xf32>
    %335 = vector.broadcast %14 : vector<1x128xf32> to vector<8x128xf32>
    %336 = arith.addf %334, %335 : vector<8x128xf32>
    %337 = vector.extract_strided_slice %336 {offsets = [0, 0], sizes = [8, 96], strides = [1, 1]} : vector<8x128xf32> to vector<8x96xf32>
    %338 = arith.negf %337 : vector<8x96xf32>
    %339 = math.exp %338 : vector<8x96xf32>
    %cst_110 = arith.constant 1.000000e+00 : f32
    %340 = vector.broadcast %cst_110 : f32 to vector<8x96xf32>
    %341 = arith.addf %340, %339 : vector<8x96xf32>
    %342 = arith.divf %340, %341 : vector<8x96xf32>
    %343 = vector.extract_strided_slice %342 {offsets = [0, 0], sizes = [8, 32], strides = [1, 1]} : vector<8x96xf32> to vector<8x32xf32>
    %344 = vector.extract_strided_slice %342 {offsets = [0, 32], sizes = [8, 32], strides = [1, 1]} : vector<8x96xf32> to vector<8x32xf32>
    %345 = vector.extract_strided_slice %342 {offsets = [0, 64], sizes = [8, 32], strides = [1, 1]} : vector<8x96xf32> to vector<8x32xf32>
    %346 = vector.extract_strided_slice %336 {offsets = [0, 96], sizes = [8, 32], strides = [1, 1]} : vector<8x128xf32> to vector<8x32xf32>
    %347 = math.tanh %346 : vector<8x32xf32>
    %348 = arith.mulf %344, %293 : vector<8x32xf32>
    %349 = arith.mulf %343, %347 : vector<8x32xf32>
    %350 = arith.addf %348, %349 : vector<8x32xf32>
    %351 = math.tanh %350 : vector<8x32xf32>
    %352 = arith.mulf %345, %351 : vector<8x32xf32>
    %353 = vector.broadcast %16 : vector<1x32xf32> to vector<8x32xf32>
    %354 = arith.mulf %352, %353 : vector<8x32xf32>
    %cst_111 = arith.constant dense<0.000000e+00> : vector<8xf32>
    %355 = vector.multi_reduction <add>, %354, %cst_111 [1] : vector<8x32xf32> to vector<8xf32>
    %356 = vector.shape_cast %355 : vector<8xf32> to vector<8x1xf32>
    %357 = vector.broadcast %18 : vector<1x1xf32> to vector<8x1xf32>
    %358 = arith.addf %356, %357 : vector<8x1xf32>
    %cst_112 = arith.constant 0.000000e+00 : f32
    %359 = vector.broadcast %cst_112 : f32 to vector<8x1xf32>
    %360 = arith.maximumf %358, %359 : vector<8x1xf32>
    %c0_113 = arith.constant 0 : index
    %361 = arith.index_cast %c5_i32 : i32 to index
    %c0_114 = arith.constant 0 : index
    %c0_115 = arith.constant 0 : index
    %362 = vector.load %arg11[%c0_113, %361, %c0_114, %c0_115] : memref<1x8x8x1xf32, #tpu.memory_space<vmem>>, vector<1x1x8x1xf32>
    %363 = vector.shape_cast %362 : vector<1x1x8x1xf32> to vector<8x1xf32>
    %364 = vector.shape_cast %360 : vector<8x1xf32> to vector<1x1x8x1xf32>
    tpu.vector_store %arg11[%c0_113, %361, %c0_114, %c0_115], %364 {strides = array<i32>} : memref<1x8x8x1xf32, #tpu.memory_space<vmem>>, vector<1x1x8x1xf32>,
    %c6_i32 = arith.constant 6 : i32
    %c0_116 = arith.constant 0 : index
    %365 = arith.index_cast %c6_i32 : i32 to index
    %c0_117 = arith.constant 0 : index
    %c0_118 = arith.constant 0 : index
    %366 = vector.load %arg2[%c0_116, %365, %c0_117, %c0_118] : memref<1x8x8x4xf32, #tpu.memory_space<vmem>>, vector<1x1x8x4xf32>
    %367 = vector.shape_cast %366 : vector<1x1x8x4xf32> to vector<8x4xf32>
    %cst_119 = arith.constant dense<0.000000e+00> : vector<8x128xf32>
    %368 = tpu.matmul %367, %4, %cst_119 {dimension_numbers = #tpu.dot_dimension_numbers<[1], [0], [0], [1], [0, 0, 1, 1], [], []>} : vector<8x4xf32>, vector<4x128xf32>, vector<8x128xf32> -> vector<8x128xf32>
    %cst_120 = arith.constant dense<0.000000e+00> : vector<8x128xf32>
    %369 = tpu.matmul %331, %6, %cst_120 {dimension_numbers = #tpu.dot_dimension_numbers<[1], [0], [0], [1], [0, 0, 1, 1], [], []>} : vector<8x32xf32>, vector<32x128xf32>, vector<8x128xf32> -> vector<8x128xf32>
    %370 = arith.addf %368, %369 : vector<8x128xf32>
    %371 = vector.broadcast %8 : vector<1x128xf32> to vector<8x128xf32>
    %372 = arith.addf %370, %371 : vector<8x128xf32>
    %373 = vector.extract_strided_slice %372 {offsets = [0, 0], sizes = [8, 96], strides = [1, 1]} : vector<8x128xf32> to vector<8x96xf32>
    %374 = arith.negf %373 : vector<8x96xf32>
    %375 = math.exp %374 : vector<8x96xf32>
    %cst_121 = arith.constant 1.000000e+00 : f32
    %376 = vector.broadcast %cst_121 : f32 to vector<8x96xf32>
    %377 = arith.addf %376, %375 : vector<8x96xf32>
    %378 = arith.divf %376, %377 : vector<8x96xf32>
    %379 = vector.extract_strided_slice %378 {offsets = [0, 0], sizes = [8, 32], strides = [1, 1]} : vector<8x96xf32> to vector<8x32xf32>
    %380 = vector.extract_strided_slice %378 {offsets = [0, 32], sizes = [8, 32], strides = [1, 1]} : vector<8x96xf32> to vector<8x32xf32>
    %381 = vector.extract_strided_slice %378 {offsets = [0, 64], sizes = [8, 32], strides = [1, 1]} : vector<8x96xf32> to vector<8x32xf32>
    %382 = vector.extract_strided_slice %372 {offsets = [0, 96], sizes = [8, 32], strides = [1, 1]} : vector<8x128xf32> to vector<8x32xf32>
    %383 = math.tanh %382 : vector<8x32xf32>
    %384 = arith.mulf %380, %329 : vector<8x32xf32>
    %385 = arith.mulf %379, %383 : vector<8x32xf32>
    %386 = arith.addf %384, %385 : vector<8x32xf32>
    %387 = math.tanh %386 : vector<8x32xf32>
    %388 = arith.mulf %381, %387 : vector<8x32xf32>
    %cst_122 = arith.constant dense<0.000000e+00> : vector<8x128xf32>
    %389 = tpu.matmul %388, %10, %cst_122 {dimension_numbers = #tpu.dot_dimension_numbers<[1], [0], [0], [1], [0, 0, 1, 1], [], []>} : vector<8x32xf32>, vector<32x128xf32>, vector<8x128xf32> -> vector<8x128xf32>
    %cst_123 = arith.constant dense<0.000000e+00> : vector<8x128xf32>
    %390 = tpu.matmul %352, %12, %cst_123 {dimension_numbers = #tpu.dot_dimension_numbers<[1], [0], [0], [1], [0, 0, 1, 1], [], []>} : vector<8x32xf32>, vector<32x128xf32>, vector<8x128xf32> -> vector<8x128xf32>
    %391 = arith.addf %389, %390 : vector<8x128xf32>
    %392 = vector.broadcast %14 : vector<1x128xf32> to vector<8x128xf32>
    %393 = arith.addf %391, %392 : vector<8x128xf32>
    %394 = vector.extract_strided_slice %393 {offsets = [0, 0], sizes = [8, 96], strides = [1, 1]} : vector<8x128xf32> to vector<8x96xf32>
    %395 = arith.negf %394 : vector<8x96xf32>
    %396 = math.exp %395 : vector<8x96xf32>
    %cst_124 = arith.constant 1.000000e+00 : f32
    %397 = vector.broadcast %cst_124 : f32 to vector<8x96xf32>
    %398 = arith.addf %397, %396 : vector<8x96xf32>
    %399 = arith.divf %397, %398 : vector<8x96xf32>
    %400 = vector.extract_strided_slice %399 {offsets = [0, 0], sizes = [8, 32], strides = [1, 1]} : vector<8x96xf32> to vector<8x32xf32>
    %401 = vector.extract_strided_slice %399 {offsets = [0, 32], sizes = [8, 32], strides = [1, 1]} : vector<8x96xf32> to vector<8x32xf32>
    %402 = vector.extract_strided_slice %399 {offsets = [0, 64], sizes = [8, 32], strides = [1, 1]} : vector<8x96xf32> to vector<8x32xf32>
    %403 = vector.extract_strided_slice %393 {offsets = [0, 96], sizes = [8, 32], strides = [1, 1]} : vector<8x128xf32> to vector<8x32xf32>
    %404 = math.tanh %403 : vector<8x32xf32>
    %405 = arith.mulf %401, %350 : vector<8x32xf32>
    %406 = arith.mulf %400, %404 : vector<8x32xf32>
    %407 = arith.addf %405, %406 : vector<8x32xf32>
    %408 = math.tanh %407 : vector<8x32xf32>
    %409 = arith.mulf %402, %408 : vector<8x32xf32>
    %410 = vector.broadcast %16 : vector<1x32xf32> to vector<8x32xf32>
    %411 = arith.mulf %409, %410 : vector<8x32xf32>
    %cst_125 = arith.constant dense<0.000000e+00> : vector<8xf32>
    %412 = vector.multi_reduction <add>, %411, %cst_125 [1] : vector<8x32xf32> to vector<8xf32>
    %413 = vector.shape_cast %412 : vector<8xf32> to vector<8x1xf32>
    %414 = vector.broadcast %18 : vector<1x1xf32> to vector<8x1xf32>
    %415 = arith.addf %413, %414 : vector<8x1xf32>
    %cst_126 = arith.constant 0.000000e+00 : f32
    %416 = vector.broadcast %cst_126 : f32 to vector<8x1xf32>
    %417 = arith.maximumf %415, %416 : vector<8x1xf32>
    %c0_127 = arith.constant 0 : index
    %418 = arith.index_cast %c6_i32 : i32 to index
    %c0_128 = arith.constant 0 : index
    %c0_129 = arith.constant 0 : index
    %419 = vector.load %arg11[%c0_127, %418, %c0_128, %c0_129] : memref<1x8x8x1xf32, #tpu.memory_space<vmem>>, vector<1x1x8x1xf32>
    %420 = vector.shape_cast %419 : vector<1x1x8x1xf32> to vector<8x1xf32>
    %421 = vector.shape_cast %417 : vector<8x1xf32> to vector<1x1x8x1xf32>
    tpu.vector_store %arg11[%c0_127, %418, %c0_128, %c0_129], %421 {strides = array<i32>} : memref<1x8x8x1xf32, #tpu.memory_space<vmem>>, vector<1x1x8x1xf32>,
    %c7_i32 = arith.constant 7 : i32
    %c0_130 = arith.constant 0 : index
    %422 = arith.index_cast %c7_i32 : i32 to index
    %c0_131 = arith.constant 0 : index
    %c0_132 = arith.constant 0 : index
    %423 = vector.load %arg2[%c0_130, %422, %c0_131, %c0_132] : memref<1x8x8x4xf32, #tpu.memory_space<vmem>>, vector<1x1x8x4xf32>
    %424 = vector.shape_cast %423 : vector<1x1x8x4xf32> to vector<8x4xf32>
    %cst_133 = arith.constant dense<0.000000e+00> : vector<8x128xf32>
    %425 = tpu.matmul %424, %4, %cst_133 {dimension_numbers = #tpu.dot_dimension_numbers<[1], [0], [0], [1], [0, 0, 1, 1], [], []>} : vector<8x4xf32>, vector<4x128xf32>, vector<8x128xf32> -> vector<8x128xf32>
    %cst_134 = arith.constant dense<0.000000e+00> : vector<8x128xf32>
    %426 = tpu.matmul %388, %6, %cst_134 {dimension_numbers = #tpu.dot_dimension_numbers<[1], [0], [0], [1], [0, 0, 1, 1], [], []>} : vector<8x32xf32>, vector<32x128xf32>, vector<8x128xf32> -> vector<8x128xf32>
    %427 = arith.addf %425, %426 : vector<8x128xf32>
    %428 = vector.broadcast %8 : vector<1x128xf32> to vector<8x128xf32>
    %429 = arith.addf %427, %428 : vector<8x128xf32>
    %430 = vector.extract_strided_slice %429 {offsets = [0, 0], sizes = [8, 96], strides = [1, 1]} : vector<8x128xf32> to vector<8x96xf32>
    %431 = arith.negf %430 : vector<8x96xf32>
    %432 = math.exp %431 : vector<8x96xf32>
    %cst_135 = arith.constant 1.000000e+00 : f32
    %433 = vector.broadcast %cst_135 : f32 to vector<8x96xf32>
    %434 = arith.addf %433, %432 : vector<8x96xf32>
    %435 = arith.divf %433, %434 : vector<8x96xf32>
    %436 = vector.extract_strided_slice %435 {offsets = [0, 0], sizes = [8, 32], strides = [1, 1]} : vector<8x96xf32> to vector<8x32xf32>
    %437 = vector.extract_strided_slice %435 {offsets = [0, 32], sizes = [8, 32], strides = [1, 1]} : vector<8x96xf32> to vector<8x32xf32>
    %438 = vector.extract_strided_slice %435 {offsets = [0, 64], sizes = [8, 32], strides = [1, 1]} : vector<8x96xf32> to vector<8x32xf32>
    %439 = vector.extract_strided_slice %429 {offsets = [0, 96], sizes = [8, 32], strides = [1, 1]} : vector<8x128xf32> to vector<8x32xf32>
    %440 = math.tanh %439 : vector<8x32xf32>
    %441 = arith.mulf %437, %386 : vector<8x32xf32>
    %442 = arith.mulf %436, %440 : vector<8x32xf32>
    %443 = arith.addf %441, %442 : vector<8x32xf32>
    %444 = math.tanh %443 : vector<8x32xf32>
    %445 = arith.mulf %438, %444 : vector<8x32xf32>
    %cst_136 = arith.constant dense<0.000000e+00> : vector<8x128xf32>
    %446 = tpu.matmul %445, %10, %cst_136 {dimension_numbers = #tpu.dot_dimension_numbers<[1], [0], [0], [1], [0, 0, 1, 1], [], []>} : vector<8x32xf32>, vector<32x128xf32>, vector<8x128xf32> -> vector<8x128xf32>
    %cst_137 = arith.constant dense<0.000000e+00> : vector<8x128xf32>
    %447 = tpu.matmul %409, %12, %cst_137 {dimension_numbers = #tpu.dot_dimension_numbers<[1], [0], [0], [1], [0, 0, 1, 1], [], []>} : vector<8x32xf32>, vector<32x128xf32>, vector<8x128xf32> -> vector<8x128xf32>
    %448 = arith.addf %446, %447 : vector<8x128xf32>
    %449 = vector.broadcast %14 : vector<1x128xf32> to vector<8x128xf32>
    %450 = arith.addf %448, %449 : vector<8x128xf32>
    %451 = vector.extract_strided_slice %450 {offsets = [0, 0], sizes = [8, 96], strides = [1, 1]} : vector<8x128xf32> to vector<8x96xf32>
    %452 = arith.negf %451 : vector<8x96xf32>
    %453 = math.exp %452 : vector<8x96xf32>
    %cst_138 = arith.constant 1.000000e+00 : f32
    %454 = vector.broadcast %cst_138 : f32 to vector<8x96xf32>
    %455 = arith.addf %454, %453 : vector<8x96xf32>
    %456 = arith.divf %454, %455 : vector<8x96xf32>
    %457 = vector.extract_strided_slice %456 {offsets = [0, 0], sizes = [8, 32], strides = [1, 1]} : vector<8x96xf32> to vector<8x32xf32>
    %458 = vector.extract_strided_slice %456 {offsets = [0, 32], sizes = [8, 32], strides = [1, 1]} : vector<8x96xf32> to vector<8x32xf32>
    %459 = vector.extract_strided_slice %456 {offsets = [0, 64], sizes = [8, 32], strides = [1, 1]} : vector<8x96xf32> to vector<8x32xf32>
    %460 = vector.extract_strided_slice %450 {offsets = [0, 96], sizes = [8, 32], strides = [1, 1]} : vector<8x128xf32> to vector<8x32xf32>
    %461 = math.tanh %460 : vector<8x32xf32>
    %462 = arith.mulf %458, %407 : vector<8x32xf32>
    %463 = arith.mulf %457, %461 : vector<8x32xf32>
    %464 = arith.addf %462, %463 : vector<8x32xf32>
    %465 = math.tanh %464 : vector<8x32xf32>
    %466 = arith.mulf %459, %465 : vector<8x32xf32>
    %467 = vector.broadcast %16 : vector<1x32xf32> to vector<8x32xf32>
    %468 = arith.mulf %466, %467 : vector<8x32xf32>
    %cst_139 = arith.constant dense<0.000000e+00> : vector<8xf32>
    %469 = vector.multi_reduction <add>, %468, %cst_139 [1] : vector<8x32xf32> to vector<8xf32>
    %470 = vector.shape_cast %469 : vector<8xf32> to vector<8x1xf32>
    %471 = vector.broadcast %18 : vector<1x1xf32> to vector<8x1xf32>
    %472 = arith.addf %470, %471 : vector<8x1xf32>
    %cst_140 = arith.constant 0.000000e+00 : f32
    %473 = vector.broadcast %cst_140 : f32 to vector<8x1xf32>
    %474 = arith.maximumf %472, %473 : vector<8x1xf32>
    %c0_141 = arith.constant 0 : index
    %475 = arith.index_cast %c7_i32 : i32 to index
    %c0_142 = arith.constant 0 : index
    %c0_143 = arith.constant 0 : index
    %476 = vector.load %arg11[%c0_141, %475, %c0_142, %c0_143] : memref<1x8x8x1xf32, #tpu.memory_space<vmem>>, vector<1x1x8x1xf32>
    %477 = vector.shape_cast %476 : vector<1x1x8x1xf32> to vector<8x1xf32>
    %478 = vector.shape_cast %474 : vector<8x1xf32> to vector<1x1x8x1xf32>
    tpu.vector_store %arg11[%c0_141, %475, %c0_142, %c0_143], %478 {strides = array<i32>} : memref<1x8x8x1xf32, #tpu.memory_space<vmem>>, vector<1x1x8x1xf32>,
    %c8_i32 = arith.constant 8 : i32
    %c0_144 = arith.constant 0 : index
    %c0_145 = arith.constant 0 : index
    %479 = vector.load %arg12[%c0_144, %c0_145] : memref<8x32xf32, #tpu.memory_space<vmem>>, vector<8x32xf32>
    tpu.vector_store %arg12[%c0_144, %c0_145], %445 {strides = array<i32>} : memref<8x32xf32, #tpu.memory_space<vmem>>, vector<8x32xf32>,
    %c0_146 = arith.constant 0 : index
    %c0_147 = arith.constant 0 : index
    %480 = vector.load %arg13[%c0_146, %c0_147] : memref<8x32xf32, #tpu.memory_space<vmem>>, vector<8x32xf32>
    tpu.vector_store %arg13[%c0_146, %c0_147], %443 {strides = array<i32>} : memref<8x32xf32, #tpu.memory_space<vmem>>, vector<8x32xf32>,
    %c0_148 = arith.constant 0 : index
    %c0_149 = arith.constant 0 : index
    %481 = vector.load %arg14[%c0_148, %c0_149] : memref<8x32xf32, #tpu.memory_space<vmem>>, vector<8x32xf32>
    tpu.vector_store %arg14[%c0_148, %c0_149], %466 {strides = array<i32>} : memref<8x32xf32, #tpu.memory_space<vmem>>, vector<8x32xf32>,
    %c0_150 = arith.constant 0 : index
    %c0_151 = arith.constant 0 : index
    %482 = vector.load %arg15[%c0_150, %c0_151] : memref<8x32xf32, #tpu.memory_space<vmem>>, vector<8x32xf32>
    tpu.vector_store %arg15[%c0_150, %c0_151], %464 {strides = array<i32>} : memref<8x32xf32, #tpu.memory_space<vmem>>, vector<8x32xf32>,
    return
  }
  func.func @transform_0(%arg0: i32, %arg1: i32) -> (i32, i32, i32, i32) {
    %c0_i32 = arith.constant 0 : i32
    %c0_i32_0 = arith.constant 0 : i32
    %c0_i32_1 = arith.constant 0 : i32
    return %arg0, %arg1, %c0_i32, %c0_i32_0 : i32, i32, i32, i32
  }
  func.func @transform_1(%arg0: i32, %arg1: i32) -> (i32, i32, i32) {
    %c0_i32 = arith.constant 0 : i32
    %c0_i32_0 = arith.constant 0 : i32
    %c0_i32_1 = arith.constant 0 : i32
    return %arg0, %c0_i32, %c0_i32_0 : i32, i32, i32
  }
  func.func @transform_2(%arg0: i32, %arg1: i32) -> (i32, i32, i32) {
    %c0_i32 = arith.constant 0 : i32
    %c0_i32_0 = arith.constant 0 : i32
    %c0_i32_1 = arith.constant 0 : i32
    return %arg0, %c0_i32, %c0_i32_0 : i32, i32, i32
  }
  func.func @transform_3(%arg0: i32, %arg1: i32) -> (i32, i32, i32) {
    %c0_i32 = arith.constant 0 : i32
    %c0_i32_0 = arith.constant 0 : i32
    %c0_i32_1 = arith.constant 0 : i32
    return %arg0, %c0_i32, %c0_i32_0 : i32, i32, i32
  }
  func.func @transform_4(%arg0: i32, %arg1: i32) -> (i32, i32, i32) {
    %c0_i32 = arith.constant 0 : i32
    %c0_i32_0 = arith.constant 0 : i32
    %c0_i32_1 = arith.constant 0 : i32
    return %arg0, %c0_i32, %c0_i32_0 : i32, i32, i32
  }
  func.func @transform_5(%arg0: i32, %arg1: i32) -> (i32, i32, i32) {
    %c0_i32 = arith.constant 0 : i32
    %c0_i32_0 = arith.constant 0 : i32
    %c0_i32_1 = arith.constant 0 : i32
    return %arg0, %c0_i32, %c0_i32_0 : i32, i32, i32
  }
  func.func @transform_6(%arg0: i32, %arg1: i32) -> (i32, i32, i32) {
    %c0_i32 = arith.constant 0 : i32
    %c0_i32_0 = arith.constant 0 : i32
    %c0_i32_1 = arith.constant 0 : i32
    return %arg0, %c0_i32, %c0_i32_0 : i32, i32, i32
  }
  func.func @transform_7(%arg0: i32, %arg1: i32) -> (i32, i32, i32) {
    %c0_i32 = arith.constant 0 : i32
    %c0_i32_0 = arith.constant 0 : i32
    %c0_i32_1 = arith.constant 0 : i32
    return %arg0, %c0_i32, %c0_i32_0 : i32, i32, i32
  }
  func.func @transform_8(%arg0: i32, %arg1: i32) -> (i32, i32, i32) {
    %c0_i32 = arith.constant 0 : i32
    %c0_i32_0 = arith.constant 0 : i32
    %c0_i32_1 = arith.constant 0 : i32
    return %arg0, %c0_i32, %c0_i32_0 : i32, i32, i32
  }
  func.func @transform_9(%arg0: i32, %arg1: i32) -> (i32, i32, i32, i32) {
    %c0_i32 = arith.constant 0 : i32
    %c0_i32_0 = arith.constant 0 : i32
    %c0_i32_1 = arith.constant 0 : i32
    return %arg0, %arg1, %c0_i32, %c0_i32_0 : i32, i32, i32, i32
  }
}

</mosaic_0001>

<bundles_post_ra>
// kernel: tpu_custom_call.1
= control target key start
LH: loop header
LB: loop body
LE: loop exit
PB: predicated region body
PF: predicated region fallthrough
CT: control target
= control target key end

     0   :  { %14 = vsyncpa [#allocation7], 0  ;;  %s5291_s0 = inlined_call_operand.vmem [shape: f32[3,8,8,4], index: 0, kind: input, shape index: {}]   ;;  %s5292_s1 = inlined_call_operand.hbm [shape: f32[3,4,128], index: 1, kind: input, shape index: {}]   ;;  %s5293_s2 = inlined_call_operand.vmem [shape: f32[3,32,128], index: 2, kind: input, shape index: {}]   ;;  %s5294_s3 = inlined_call_operand.vmem [shape: f32[3,1,128], index: 3, kind: input, shape index: {}]   ;;  %s5295_s4 = inlined_call_operand.vmem [shape: f32[3,32,128], index: 4, kind: input, shape index: {}]   ;;  %s5296_s5 = inlined_call_operand.vmem [shape: f32[3,32,128], index: 5, kind: input, shape index: {}]   ;;  %s5297_s6 = inlined_call_operand.vmem [shape: f32[3,1,128], index: 6, kind: input, shape index: {}]   ;;  %s5298_s7 = inlined_call_operand.vmem [shape: f32[3,1,32], index: 7, kind: input, shape index: {}]   ;;  %s5299_s8 = inlined_call_operand.vmem [shape: f32[3,1,1], index: 8, kind: input, shape index: {}]   ;;  %s5300_s9 = inlined_call_operand.vmem [shape: f32[3,8,8,1], index: 9, kind: output, shape index: {}]  }
   0x1   :  { %16 = vsyncpa [#allocation7 + $0x1], 0  ;;  %s4528_s30 = smov 0   ;;  %s4530_s10 = smov 0  }
   0x2   :  { %s4532_s11 = smov 0   ;;  %s4534_s12 = smov 0  }
   0x3   :  { %s4536_s13 = smov 0   ;;  %s4538_s14 = smov 0  }
   0x4 LB: > { %s3650_s15 = sadd.s32 4294967295, %s4470_s14   ;;  %s34_s16 = sadd.s32 1, %s4466_s13  ;;  %s4470_s14 = sphi %s4538_s14, %s22_s14   ;;  %s4466_s13 = sphi %s4536_s13, %s5308_s13   ;;  %s4462_s12 = sphi %s4534_s12, %s5307_s12   ;;  %s4458_s11 = sphi %s4532_s11, %s5306_s11   ;;  %s4454_s10 = sphi %s4530_s10, %s5305_s10   ;;  %s4450_s30 = sphi %s4528_s30, %s5304_s30  }
   0x5   : > { %p36_p0 = scmp.ge.s32.totalorder %s34_s16, 3  ;;  %s69_s17 = sadd.s32 1, %s4458_s11 }
   0x6   : > { %p76_p1 = scmp.ne.s32.totalorder %s4458_s11, %s4454_s10  ;;  %p77_p2 = scmp.eq.s32.totalorder %s4470_s14, 0 }
   0x7   : > { %s5310_s16 = smov (%p36_p0, %s34_s16), 0  ;;  %p82_p4 = scmp.ne.s32.totalorder %s4454_s10, %s4450_s30 }
   0x8   : > { %p4564_p3 = por %p77_p2, %p76_p1  ;;  %s66_s19 = ssub.s32 %s4466_s13, %s5310_s16 }
   0x9   : > { %p83_p5 = scmp.eq.s32.totalorder %s3650_s15, 0  ;;  %p67_p6 = scmp.eq.s32.totalorder %s66_s19, 0 }
   0xa   : > { %p4195_p8 = scmp.lt.s32.totalorder %s4470_s14, 3  ;;  %s329_s22 = sand.u32 1, %s4458_s11  }
   0xb   : > { %p4571_p7 = por %p83_p5, %p82_p4  ;;  %s3655_s23 = sshll.u32 %s4466_s13, 6 }
   0xc   : > { %s4577_s21 = scalar_select %p67_p6, %s4458_s11, %s69_s17  }
   0xd   : > { %s3654_s24 = sshll.u32 %s329_s22, 2  ;;  %s338_s27 = scalar_lea.hbm %s5292_s1, %s3655_s23 }
   0xe   : > { %s333_s28 = scalar_lea.vmem [#allocation6], %s3654_s24  ;;  %p4586_p9 = pnand %p4195_p8, %p4564_p3 }
   0xf   : > { %s340_s29 = sshll.u32 %s333_s28, 4  ;;  %p3656_p10 = scmp.ge.s32.totalorder %s4470_s14, 1  ;;  %s341_s29 = int_to_ptr.vmem [resolvable:$true] %s340_s29 }
  0x10   : > { %p393_p11 = scmp.lt.s32.totalorder %s4470_s14, 4  ;;  %s330_s15 = scalar_lea.sflag [#allocation7], %s329_s22 }
  0x11   : > { %p4394_p12 = pneg %p4586_p9  ;;  %s4405_s17 = scalar_lea.vmem %s341_s29, 64 }
  0x12   : > { %p4406_p13 = scmp.ne.s32.totalorder %s341_s29, %s4405_s17  ;;  %s4472_s19 = smov [#allocation6]  }
  0x13   : > { %s4410_s23 = sshll.u32 %s4472_s19, 4  ;;  %s4411_s23 = int_to_ptr.vmem [resolvable:$false] %s4410_s23 }
  0x14   : > { %p4408_p0 = pnand %p4406_p13, %p4394_p12  ;;  %s4412_s24 = scalar_lea.vmem %s4411_s23, 128 }
  0x15   : > { %p4413_p2 = scmp.lt.s32.totalorder %s341_s29, %s4411_s23  ;;  %p4414_p3 = scmp.lt.s32.totalorder %s4412_s24, %s4405_s17 }
  0x16   : > { %p4409_p1 = pneg %p4408_p0 }
  0x17   : > { %p4415_p4 = por %p4414_p3, %p4413_p2 }
  0x19   : > { %p4416_p5 = pnand %p4415_p4, %p4409_p1 }
  0x1b   : > { %4419 = shalt.err (!%p4416_p5)
}
  0x1c   : > { %4194 = dma.hbm_to_vmem [thread:$0]  (!%p4586_p9), %s338_s27, 64, %s341_s29, %s330_s15  }
  0x1d   : > { %p394_p6 = pnand %p3656_p10, %p393_p11 }
  0x1e   : > { %s399_s18 = sand.u32 (!%p394_p6), 1, %s4454_s10  }
  0x1f   : > { %397 = sbr.rel (%p394_p6) target bundleno = 6549 (0x1995), region = 56  ;;  %s4601_s22 = sshll.u32 (!%p394_p6), %s399_s18, 2 }
  0x20   : > { %s400_s25 = scalar_lea.sflag (!%p394_p6), [#allocation7], %s399_s18  ;;  %s403_s26 = scalar_lea.vmem (!%p394_p6), [#allocation6], %s4601_s22 }
  0x24   : > { %4445 = dma.done.wait (%p4571_p7), %s400_s25, 64  }
  0x25   : > { %4447 = vsyncadd (%p4571_p7), %s400_s25, 4294967232  ;;  %p479_p8 = scmp.lt.s32.totalorder %s4462_s12, 2  ;;  %v4473_v0 = vmov 0.0   ;;  %vm529_vm0 = vcmask 261120   ;;  %vm4474_vm1 = vmmov 0   ;;  %vm634_vm2 = vcmask 1043456  }
  0x26   : > { %3885 = vmatprep.subr.mxu0 %v4473_v0  ;;  %3896 = vmatprep.subr.mxu1 %v4473_v0  ;;  %530 = vst.msk [vmem:[#allocation2] sm:$0xff] %vm529_vm0, %v4473_v0  ;;  %531 = vst.msk [vmem:[#allocation3] sm:$0xff] %vm529_vm0, %v4473_v0  ;;  %vm630_vm3 = vcmask 31744   ;;  %v4652_v3 = vld [vmem:[%s403_s26] sm:$0xf]  ;;  %s4475_s25 = smov 32  }
  0x27   : > { %s5312_s12 = smov (!%p479_p8, %s4462_s12), 2  ;;  %3898 = vmatprep.mubr.msk.f32.mxu1 %vm4474_vm1, %v4473_v0  ;;  %3893 = vmatprep.mubr.msk.f32.mxu0 %vm4474_vm1, %v4473_v0  ;;  %532 = vst.msk [vmem:[#allocation4] sm:$0xff] %vm529_vm0, %v4473_v0  ;;  %533 = vst.msk [vmem:[#allocation5] sm:$0xff] %vm529_vm0, %v4473_v0  ;;  %vm950_vm4 = vcmask 7168  }
  0x28   : > { %s4627_s20 = sshll.u32 %s5312_s12, 5  ;;  %s3744_s27 = sshll.u32 %s5312_s12, 6  ;;  %3897 = vmatpush3.msk.msra.mxu1 %vm634_vm2, %v4652_v3 }
  0x29   : > { %s4634_s30 = scalar_lea.vmem %s5293_s2, %s4627_s20  ;;  %s4641_s19 = scalar_lea.vmem %s5291_s0, %s3744_s27  ;;  %3901 = vmatprep.subr.mxu1 %v4473_v0 }
  0x2a   : > { %v4644_v1 = vld [vmem:[%s4634_s30 + $0x18] sm:$0xff]  ;;  %v4647_v2 = vld [vmem:[%s4634_s30 + $0x10] sm:$0xff]  ;;  %v555_v4 = vld [vmem:[%s4641_s19] sm:$0xff]  ;;  %s4681_s18 = scalar_lea.vmem %s5294_s3, %s5312_s12  ;;  %s4697_s15 = scalar_lea.vmem %s5296_s5, %s4627_s20 }
  0x2b   : > { %3886 = vmatpush3.msra.mxu0 %v4644_v1  ;;  %v4657_v5 = vld [vmem:[%s4634_s30 + $0x8] sm:$0xff]  ;;  %3899 = vmatmul.mubr.msk.f32.vlgmr.msra.gmra.mxu1 %vm630_vm3, %v555_v4  ;;  %v4665_v6 = vld [vmem:[%s4634_s30] sm:$0xff]  ;;  %s4703_s24 = scalar_lea.vmem %s5295_s4, %s4627_s20  ;;  %v4706_v27 = vld [vmem:[%s4697_s15 + $0x18] sm:$0xff]  ;;  %s4476_s20 = smov 64  }
  0x2c   : > { %3887 = vmatprep.subr.mxu0 %v4473_v0  ;;  %3909 = vmatprep.mubr.msk.f32.mxu1 %vm4474_vm1, %v4473_v0  ;;  %v4684_v10 = vld [vmem:[%s4681_s18] ss:$0 sm:$0xff]  ;;  %v4709_v28 = vld [vmem:[%s4697_s15 + $0x10] sm:$0xff]  ;;  %v4713_v29 = vld [vmem:[%s4703_s24 + $0x18] sm:$0xff]  ;;  %s4791_s17 = scalar_lea.vmem %s5297_s6, %s5312_s12  ;;  %s5228_s28 = scalar_lea.vmem %s5300_s9, %s3744_s27 }
  0x2d   : > { %3888 = vmatpush3.msra.mxu0 %v4647_v2  ;;  %v551_v7 = vld [vmem:[#allocation2] sm:$0xff]  ;;  %v552_v16 = vld [vmem:[#allocation3] sm:$0xff]  ;;  %3902 = vmatpush3.msra.mxu1 %v4706_v27  ;;  %v4716_v30 = vld [vmem:[%s4703_s24 + $0x10] sm:$0xff] }
  0x2e   : > { %3889 = vmatprep.subr.mxu0 %v4473_v0  ;;  %3903 = vmatprep.subr.mxu1 %v4473_v0  ;;  %v4720_v31 = vld [vmem:[%s4697_s15 + $0x8] sm:$0xff]  ;;  %v4730_v33 = vld [vmem:[%s4697_s15] sm:$0xff]  ;;  %v553_v34 = vld [vmem:[#allocation4] sm:$0xff] }
  0x2f   : > { %3890 = vmatpush3.msra.mxu0 %v4657_v5  ;;  %3904 = vmatpush3.msra.mxu1 %v4709_v28  ;;  %v4726_v32 = vld [vmem:[%s4703_s24 + $0x8] sm:$0xff]  ;;  %v4738_v35 = vld [vmem:[%s4703_s24] sm:$0xff]  ;;  %v554_v55 = vld [vmem:[#allocation5] sm:$0xff] }
  0x30   : > { %3891 = vmatprep.subr.mxu0 %v4473_v0  ;;  %3905 = vmatprep.subr.mxu1 %v4473_v0  ;;  %v3679_v42 = vld [vmem:[%s4641_s19 + $0x8] sm:$0xff]  ;;  %v4794_v43 = vld [vmem:[%s4791_s17] ss:$0 sm:$0xff] }
  0x31   : > { %3892 = vmatpush3.msra.mxu0 %v4665_v6  ;;  %3906 = vmatpush3.msra.mxu1 %v4720_v31 }
  0x32   : > { %3894 = vmatmul.mubr.msk.f32.vlgmr.msra.gmra.mxu0 %vm529_vm0, %v551_v7  ;;  %3912 = vmatprep.subr.mxu0 %v4473_v0 }
  0x33   : > { %3920 = vmatprep.mubr.msk.f32.mxu0 %vm4474_vm1, %v4473_v0  ;;  %3913 = vmatpush3.msra.mxu0 %v4713_v29 }
  0x34   : > { %3914 = vmatprep.subr.mxu0 %v4473_v0  ;;  %3907 = vmatprep.subr.mxu1 %v4473_v0 }
  0x35   : > { %3915 = vmatpush3.msra.mxu0 %v4716_v30  ;;  %3908 = vmatpush3.msra.mxu1 %v4730_v33 }
  0x36   : > { %3916 = vmatprep.subr.mxu0 %v4473_v0  ;;  %3923 = vmatprep.subr.mxu1 %v4473_v0 }
  0x37   : > { %3917 = vmatpush3.msra.mxu0 %v4726_v32  ;;  %3910 = vmatmul.mubr.msk.f32.vlgmr.msra.gmra.mxu1 %vm529_vm0, %v553_v34  ;;  %v3688_v34 = vld [vmem:[%s4641_s19 + $0x10] sm:$0xff] }
  0x38   : > { %3918 = vmatprep.subr.mxu0 %v4473_v0  ;;  %3924 = vmatpush3.msra.mxu1 %v4644_v1 }
  0x39   : > { %3919 = vmatpush3.msra.mxu0 %v4738_v35  ;;  %3925 = vmatprep.subr.mxu1 %v4473_v0 }
  0x3a   : > { %3926 = vmatpush3.msra.mxu1 %v4647_v2  ;;  %3931 = vmatprep.mubr.msk.f32.mxu1 %vm4474_vm1, %v4473_v0 }
  0x3b   : > { %3927 = vmatprep.subr.mxu1 %v4473_v0  ;;  %3934 = vmatprep.subr.mxu0 %v4473_v0 }
  0x3c   : > { %3928 = vmatpush3.msra.mxu1 %v4657_v5 }
  0x3d   : > { %3929 = vmatprep.subr.mxu1 %v4473_v0 }
  0x3e   : > { %3930 = vmatpush3.msra.mxu1 %v4665_v6 }
  0x3f   : > { %3939 = vmatprep.subr.mxu1 %v4473_v0 }
  0xeb   : > { %v704_v8 = vpop.f32.mrf.mxu1 }
  0xed   : > { %v3900_v9 = vpop.f32.mrf.mxu1 }
  0xf2   : > { %v626_v11 = vpop.f32.mrf.mxu0 }
  0xf3   : > { %v705_v12 = vadd.f32 %v704_v8, %v626_v11 }
  0xf4   : > { %v3895_v13 = vpop.f32.mrf.mxu0 }
  0xf5   : > { %v714_v14 = vadd.f32 %v4684_v10, %v705_v12 }
  0xf7   : > { %4249 = vtanh.f32 %v714_v14  ;;  %v3672_v17 = vmul.f32 -1.442695, %v714_v14  ;;  %v812_v39 = vpop.f32.mrf.mxu1 }
  0xf9   : > { %4251 = vpow2.f32 %v3672_v17  ;;  %v3911_v40 = vpop.f32.mrf.mxu1 }
 0x104   : > { %v4250_v15 = vpop.eup %4249 }
 0x105   : > { %728 = vrot.lane.b32.xlu0 %v4250_v15, %s4475_s25 }
 0x106   : > { %v4252_v18 = vpop.eup %4251 }
 0x107   : > { %v718_v19 = vadd.f32 1.0, %v4252_v18 }
 0x109   : > { %723 = vrot.lane.b32.xlu0 %v552_v16, %s4475_s25  ;;  %4253 = vrcp.f32 %v718_v19 }
 0x116   : > { %v4254_v20 = vpop.eup %4253 }
 0x177   : > { %v729_v21 = vpop.permute.xlu0 %728 }
 0x178   : > { %v731_v22 = vmul.f32 %v4254_v20, %v729_v21 }
 0x17a   : > { %733 = vrot.lane.b32.xlu1 %v731_v22, %s4475_s25 }
 0x17b   : > { %v724_v23 = vpop.permute.xlu0 %723 }
 0x17c   : > { %v726_v24 = vmul.f32 %v4254_v20, %v724_v23 }
 0x1ec   : > { %v734_v25 = vpop.permute.xlu1 %733 }
 0x1ed   : > { %v4690_v26 = vadd.f32 %v734_v25, %v726_v24 }
 0x1ef   : > { %4255 = vtanh.f32 %v4690_v26 }
 0x1fc   : > { %v4256_v36 = vpop.eup %4255 }
 0x1fd   : > { %739 = vrot.lane.b32.xlu1 %v4256_v36, %s4475_s25 }
 0x26f   : > { %v740_v37 = vpop.permute.xlu1 %739 }
 0x270   : > { %v742_v38 = vmul.f32 %v4254_v20, %v740_v37 }
 0x272   : > { %817 = vrot.lane.b32.xlu0 %v742_v38, %s4476_s20 }
 0x2e4   : > { %v818_v41 = vpop.permute.xlu0 %817 }
 0x2e5   : > { %3921 = vmatmul.mubr.msk.f32.vlgmr.msra.gmra.mxu0 %vm529_vm0, %v818_v41  ;;  %3932 = vmatmul.mubr.msk.f32.vlgmr.msra.gmra.mxu1 %vm529_vm0, %v818_v41 }
 0x2e6   : > { %3935 = vmatpush3.msk.msra.mxu0 %vm634_vm2, %v4652_v3  ;;  %3936 = vmatprep.mubr.msk.f32.mxu0 %vm4474_vm1, %v4473_v0 }
 0x2e7   : > { %3940 = vmatpush3.msra.mxu1 %v4706_v27  ;;  %3950 = vmatprep.subr.mxu0 %v4473_v0 }
 0x2e8   : > { %3941 = vmatprep.subr.mxu1 %v4473_v0  ;;  %3947 = vmatprep.mubr.msk.f32.mxu1 %vm4474_vm1, %v4473_v0 }
 0x2e9   : > { %3937 = vmatmul.mubr.msk.f32.vlgmr.msra.gmra.mxu0 %vm630_vm3, %v3679_v42  ;;  %3942 = vmatpush3.msra.mxu1 %v4709_v28 }
 0x2ea   : > { %3943 = vmatprep.subr.mxu1 %v4473_v0  ;;  %3951 = vmatpush3.msra.mxu0 %v4713_v29 }
 0x2eb   : > { %3944 = vmatpush3.msra.mxu1 %v4720_v31  ;;  %3952 = vmatprep.subr.mxu0 %v4473_v0 }
 0x2ec   : > { %3945 = vmatprep.subr.mxu1 %v4473_v0  ;;  %3953 = vmatpush3.msra.mxu0 %v4716_v30 }
 0x2ed   : > { %3946 = vmatpush3.msra.mxu1 %v4730_v33  ;;  %3954 = vmatprep.subr.mxu0 %v4473_v0 }
 0x2ee   : > { %3961 = vmatprep.subr.mxu1 %v4473_v0  ;;  %3955 = vmatpush3.msra.mxu0 %v4726_v32 }
 0x2ef   : > { %3956 = vmatprep.subr.mxu0 %v4473_v0  ;;  %3958 = vmatprep.mubr.msk.f32.mxu0 %vm4474_vm1, %v4473_v0 }
 0x2f0   : > { %3957 = vmatpush3.msra.mxu0 %v4738_v35 }
 0x2f1   : > { %3972 = vmatprep.subr.mxu0 %v4473_v0 }
 0x3a5   : > { %v887_v44 = vpop.f32.mrf.mxu0  ;;  %v1020_v45 = vpop.f32.mrf.mxu1 }
 0x3a6   : > { %v888_v46 = vadd.f32 %v887_v44, %v812_v39 }
 0x3a7   : > { %v3922_v47 = vpop.f32.mrf.mxu0  ;;  %v3933_v48 = vpop.f32.mrf.mxu1 }
 0x3a8   : > { %v897_v49 = vadd.f32 %v4794_v43, %v888_v46 }
 0x3a9   : > { %v1093_v50 = vpop.f32.mrf.mxu0 }
 0x3aa   : > { %4257 = vtanh.f32 %v897_v49  ;;  %v1094_v51 = vadd.f32 %v1093_v50, %v1020_v45  ;;  %v3676_v57 = vmul.f32 -1.442695, %v897_v49 }
 0x3ab   : > { %v3938_v52 = vpop.f32.mrf.mxu0 }
 0x3ac   : > { %v1097_v53 = vadd.f32 %v4684_v10, %v1094_v51 }
 0x3ae   : > { %4259 = vtanh.f32 %v1097_v53  ;;  %v3683_v58 = vmul.f32 -1.442695, %v1097_v53 }
 0x3af   : > { %4261 = vpow2.f32 %v3676_v57 }
 0x3b0   : > { %4263 = vpow2.f32 %v3683_v58 }
 0x3b7   : > { %v4258_v54 = vpop.eup %4257 }
 0x3b8   : > { %911 = vrot.lane.b32.xlu1 %v4258_v54, %s4475_s25 }
 0x3bb   : > { %v4260_v56 = vpop.eup %4259 }
 0x3bc   : > { %906 = vrot.lane.b32.xlu1 %v554_v55, %s4475_s25  ;;  %1107 = vrot.lane.b32.xlu0 %v4260_v56, %s4475_s25  ;;  %v4262_v59 = vpop.eup %4261 }
 0x3bd   : > { %v901_v60 = vadd.f32 1.0, %v4262_v59  ;;  %v4264_v61 = vpop.eup %4263 }
 0x3be   : > { %v1101_v62 = vadd.f32 1.0, %v4264_v61 }
 0x3bf   : > { %4265 = vrcp.f32 %v901_v60 }
 0x3c0   : > { %4267 = vrcp.f32 %v1101_v62 }
 0x3cc   : > { %v4266_v63 = vpop.eup %4265 }
 0x3cd   : > { %v4268_v8 = vpop.eup %4267 }
 0x3ce   : > { %v1105_v16 = vmul.f32 %v4268_v8, %v4690_v26 }
 0x42a   : > { %v912_v4 = vpop.permute.xlu1 %911 }
 0x42b   : > { %v914_v7 = vmul.f32 %v4266_v63, %v912_v4 }
 0x42d   : > { %916 = vrot.lane.b32.xlu0 %v914_v7, %s4475_s25 }
 0x42e   : > { %v1108_v9 = vpop.permute.xlu0 %1107  ;;  %v907_v12 = vpop.permute.xlu1 %906 }
 0x42f   : > { %v1110_v11 = vmul.f32 %v4268_v8, %v1108_v9  ;;  %v909_v13 = vmul.f32 %v4266_v63, %v907_v12 }
 0x431   : > { %1112 = vrot.lane.b32.xlu1 %v1110_v11, %s4475_s25 }
 0x49f   : > { %v917_v14 = vpop.permute.xlu0 %916 }
 0x4a0   : > { %v4803_v15 = vadd.f32 %v917_v14, %v909_v13 }
 0x4a2   : > { %4269 = vtanh.f32 %v4803_v15 }
 0x4a3   : > { %v1113_v17 = vpop.permute.xlu1 %1112 }
 0x4a4   : > { %v4807_v18 = vadd.f32 %v1113_v17, %v1105_v16 }
 0x4a6   : > { %4271 = vtanh.f32 %v4807_v18 }
 0x4af   : > { %v4270_v19 = vpop.eup %4269 }
 0x4b0   : > { %922 = vrot.lane.b32.xlu0 %v4270_v19, %s4475_s25 }
 0x4b3   : > { %v4272_v20 = vpop.eup %4271 }
 0x4b4   : > { %1118 = vrot.lane.b32.xlu1 %v4272_v20, %s4475_s25  ;;  %v3697_v20 = vld [vmem:[%s4641_s19 + $0x18] sm:$0xff] }
 0x522   : > { %v923_v21 = vpop.permute.xlu0 %922 }
 0x523   : > { %v4812_v22 = vmul.f32 %v4266_v63, %v923_v21 }
 0x525   : > { %1123 = vrot.lane.b32.xlu0 %v4812_v22, %s4476_s20 }
 0x526   : > { %v1119_v23 = vpop.permute.xlu1 %1118 }
 0x527   : > { %v1121_v24 = vmul.f32 %v4268_v8, %v1119_v23 }
 0x529   : > { %1198 = vrot.lane.b32.xlu1 %v1121_v24, %s4476_s20 }
 0x597   : > { %v1124_v25 = vpop.permute.xlu0 %1123 }
 0x598   : > { %3948 = vmatmul.mubr.msk.f32.vlgmr.msra.gmra.mxu1 %vm529_vm0, %v1124_v25 }
 0x599   : > { %3962 = vmatpush3.msra.mxu1 %v4644_v1  ;;  %3969 = vmatprep.mubr.msk.f32.mxu1 %vm4474_vm1, %v4473_v0 }
 0x59a   : > { %3963 = vmatprep.subr.mxu1 %v4473_v0 }
 0x59b   : > { %3964 = vmatpush3.msra.mxu1 %v4647_v2  ;;  %v1199_v26 = vpop.permute.xlu1 %1198 }
 0x59c   : > { %3965 = vmatprep.subr.mxu1 %v4473_v0  ;;  %3959 = vmatmul.mubr.msk.f32.vlgmr.msra.gmra.mxu0 %vm529_vm0, %v1199_v26 }
 0x59d   : > { %3966 = vmatpush3.msra.mxu1 %v4657_v5  ;;  %3973 = vmatpush3.msk.msra.mxu0 %vm634_vm2, %v4652_v3 }
 0x59e   : > { %3967 = vmatprep.subr.mxu1 %v4473_v0  ;;  %3974 = vmatprep.mubr.msk.f32.mxu0 %vm4474_vm1, %v4473_v0 }
 0x59f   : > { %3968 = vmatpush3.msra.mxu1 %v4665_v6  ;;  %3977 = vmatprep.subr.mxu0 %v4473_v0 }
 0x5a0   : > { %3970 = vmatmul.mubr.msk.f32.vlgmr.msra.gmra.mxu1 %vm529_vm0, %v1199_v26  ;;  %3975 = vmatmul.mubr.msk.f32.vlgmr.msra.gmra.mxu0 %vm630_vm3, %v3688_v34 }
 0x5a1   : > { %3978 = vmatpush3.msra.mxu0 %v4706_v27  ;;  %3988 = vmatprep.subr.mxu1 %v4473_v0 }
 0x5a2   : > { %3979 = vmatprep.subr.mxu0 %v4473_v0  ;;  %3989 = vmatpush3.msra.mxu1 %v4713_v29 }
 0x5a3   : > { %3980 = vmatpush3.msra.mxu0 %v4709_v28  ;;  %3990 = vmatprep.subr.mxu1 %v4473_v0 }
 0x5a4   : > { %3981 = vmatprep.subr.mxu0 %v4473_v0  ;;  %3991 = vmatpush3.msra.mxu1 %v4716_v30 }
 0x5a5   : > { %3982 = vmatpush3.msra.mxu0 %v4720_v31  ;;  %3985 = vmatprep.mubr.msk.f32.mxu0 %vm4474_vm1, %v4473_v0 }
 0x5a6   : > { %3983 = vmatprep.subr.mxu0 %v4473_v0  ;;  %3992 = vmatprep.subr.mxu1 %v4473_v0 }
 0x5a7   : > { %3984 = vmatpush3.msra.mxu0 %v4730_v33  ;;  %3993 = vmatpush3.msra.mxu1 %v4726_v32 }
 0x5a8   : > { %3999 = vmatprep.subr.mxu0 %v4473_v0  ;;  %3994 = vmatprep.subr.mxu1 %v4473_v0 }
 0x5a9   : > { %3995 = vmatpush3.msra.mxu1 %v4738_v35  ;;  %3996 = vmatprep.mubr.msk.f32.mxu1 %vm4474_vm1, %v4473_v0 }
 0x5aa   : > { %4010 = vmatprep.subr.mxu1 %v4473_v0 }
 0x658   : > { %v1193_v36 = vpop.f32.mrf.mxu1 }
 0x65a   : > { %v3949_v37 = vpop.f32.mrf.mxu1 }
 0x65c   : > { %v1268_v38 = vpop.f32.mrf.mxu0 }
 0x65d   : > { %v1269_v39 = vadd.f32 %v1268_v38, %v1193_v36 }
 0x65e   : > { %v3960_v40 = vpop.f32.mrf.mxu0 }
 0x65f   : > { %v1272_v41 = vadd.f32 %v4794_v43, %v1269_v39 }
 0x660   : > { %v1377_v42 = vpop.f32.mrf.mxu1  ;;  %v1450_v44 = vpop.f32.mrf.mxu0 }
 0x661   : > { %4273 = vtanh.f32 %v1272_v41  ;;  %v1451_v45 = vadd.f32 %v1450_v44, %v1377_v42  ;;  %v3686_v51 = vmul.f32 -1.442695, %v1272_v41 }
 0x662   : > { %v3971_v46 = vpop.f32.mrf.mxu1  ;;  %v3976_v47 = vpop.f32.mrf.mxu0 }
 0x663   : > { %v1454_v48 = vadd.f32 %v4684_v10, %v1451_v45 }
 0x665   : > { %4275 = vtanh.f32 %v1454_v48  ;;  %v3692_v52 = vmul.f32 -1.442695, %v1454_v48 }
 0x666   : > { %4277 = vpow2.f32 %v3686_v51 }
 0x667   : > { %4279 = vpow2.f32 %v3692_v52 }
 0x66e   : > { %v4274_v49 = vpop.eup %4273 }
 0x66f   : > { %1282 = vrot.lane.b32.xlu0 %v4274_v49, %s4475_s25 }
 0x672   : > { %v4276_v50 = vpop.eup %4275 }
 0x673   : > { %1464 = vrot.lane.b32.xlu1 %v4276_v50, %s4475_s25  ;;  %v4278_v53 = vpop.eup %4277 }
 0x674   : > { %v1276_v54 = vadd.f32 1.0, %v4278_v53  ;;  %v4280_v55 = vpop.eup %4279 }
 0x675   : > { %v1458_v56 = vadd.f32 1.0, %v4280_v55 }
 0x676   : > { %4281 = vrcp.f32 %v1276_v54 }
 0x677   : > { %4283 = vrcp.f32 %v1458_v56 }
 0x683   : > { %v4282_v57 = vpop.eup %4281 }
 0x684   : > { %v4284_v60 = vpop.eup %4283  ;;  %v1280_v63 = vmul.f32 %v4282_v57, %v4803_v15 }
 0x685   : > { %v1462_v8 = vmul.f32 %v4284_v60, %v4807_v18 }
 0x6e1   : > { %v1283_v58 = vpop.permute.xlu0 %1282 }
 0x6e2   : > { %v1285_v59 = vmul.f32 %v4282_v57, %v1283_v58 }
 0x6e4   : > { %1287 = vrot.lane.b32.xlu0 %v1285_v59, %s4475_s25 }
 0x6e5   : > { %v1465_v61 = vpop.permute.xlu1 %1464 }
 0x6e6   : > { %v1467_v62 = vmul.f32 %v4284_v60, %v1465_v61 }
 0x6e8   : > { %1469 = vrot.lane.b32.xlu1 %v1467_v62, %s4475_s25 }
 0x756   : > { %v1288_v4 = vpop.permute.xlu0 %1287 }
 0x757   : > { %v4864_v7 = vadd.f32 %v1288_v4, %v1280_v63 }
 0x759   : > { %4285 = vtanh.f32 %v4864_v7 }
 0x75a   : > { %v1470_v9 = vpop.permute.xlu1 %1469 }
 0x75b   : > { %v4868_v11 = vadd.f32 %v1470_v9, %v1462_v8 }
 0x75d   : > { %4287 = vtanh.f32 %v4868_v11 }
 0x766   : > { %v4286_v12 = vpop.eup %4285 }
 0x767   : > { %1293 = vrot.lane.b32.xlu0 %v4286_v12, %s4475_s25 }
 0x76a   : > { %v4288_v13 = vpop.eup %4287 }
 0x76b   : > { %1475 = vrot.lane.b32.xlu1 %v4288_v13, %s4475_s25 }
 0x7d9   : > { %v1294_v14 = vpop.permute.xlu0 %1293 }
 0x7da   : > { %v4873_v15 = vmul.f32 %v4282_v57, %v1294_v14  ;;  %v3706_v14 = vld [vmem:[%s4641_s19 + $0x20] sm:$0xff] }
 0x7dc   : > { %1480 = vrot.lane.b32.xlu0 %v4873_v15, %s4476_s20 }
 0x7dd   : > { %v1476_v16 = vpop.permute.xlu1 %1475 }
 0x7de   : > { %v1478_v17 = vmul.f32 %v4284_v60, %v1476_v16 }
 0x7e0   : > { %1555 = vrot.lane.b32.xlu1 %v1478_v17, %s4476_s20 }
 0x84e   : > { %v1481_v18 = vpop.permute.xlu0 %1480 }
 0x84f   : > { %3986 = vmatmul.mubr.msk.f32.vlgmr.msra.gmra.mxu0 %vm529_vm0, %v1481_v18 }
 0x850   : > { %4000 = vmatpush3.msra.mxu0 %v4644_v1  ;;  %4007 = vmatprep.mubr.msk.f32.mxu0 %vm4474_vm1, %v4473_v0 }
 0x851   : > { %4001 = vmatprep.subr.mxu0 %v4473_v0 }
 0x852   : > { %4002 = vmatpush3.msra.mxu0 %v4647_v2  ;;  %v1556_v19 = vpop.permute.xlu1 %1555 }
 0x853   : > { %4003 = vmatprep.subr.mxu0 %v4473_v0  ;;  %3997 = vmatmul.mubr.msk.f32.vlgmr.msra.gmra.mxu1 %vm529_vm0, %v1556_v19 }
 0x854   : > { %4004 = vmatpush3.msra.mxu0 %v4657_v5  ;;  %4011 = vmatpush3.msk.msra.mxu1 %vm634_vm2, %v4652_v3 }
 0x855   : > { %4005 = vmatprep.subr.mxu0 %v4473_v0  ;;  %4012 = vmatprep.mubr.msk.f32.mxu1 %vm4474_vm1, %v4473_v0 }
 0x856   : > { %4006 = vmatpush3.msra.mxu0 %v4665_v6  ;;  %4015 = vmatprep.subr.mxu1 %v4473_v0 }
 0x857   : > { %4008 = vmatmul.mubr.msk.f32.vlgmr.msra.gmra.mxu0 %vm529_vm0, %v1556_v19  ;;  %4013 = vmatmul.mubr.msk.f32.vlgmr.msra.gmra.mxu1 %vm630_vm3, %v3697_v20 }
 0x858   : > { %4016 = vmatpush3.msra.mxu1 %v4706_v27  ;;  %4026 = vmatprep.subr.mxu0 %v4473_v0 }
 0x859   : > { %4017 = vmatprep.subr.mxu1 %v4473_v0  ;;  %4027 = vmatpush3.msra.mxu0 %v4713_v29 }
 0x85a   : > { %4018 = vmatpush3.msra.mxu1 %v4709_v28  ;;  %4028 = vmatprep.subr.mxu0 %v4473_v0 }
 0x85b   : > { %4019 = vmatprep.subr.mxu1 %v4473_v0  ;;  %4029 = vmatpush3.msra.mxu0 %v4716_v30 }
 0x85c   : > { %4020 = vmatpush3.msra.mxu1 %v4720_v31  ;;  %4023 = vmatprep.mubr.msk.f32.mxu1 %vm4474_vm1, %v4473_v0 }
 0x85d   : > { %4021 = vmatprep.subr.mxu1 %v4473_v0  ;;  %4030 = vmatprep.subr.mxu0 %v4473_v0 }
 0x85e   : > { %4022 = vmatpush3.msra.mxu1 %v4730_v33  ;;  %4031 = vmatpush3.msra.mxu0 %v4726_v32 }
 0x85f   : > { %4037 = vmatprep.subr.mxu1 %v4473_v0  ;;  %4032 = vmatprep.subr.mxu0 %v4473_v0 }
 0x860   : > { %4033 = vmatpush3.msra.mxu0 %v4738_v35  ;;  %4034 = vmatprep.mubr.msk.f32.mxu0 %vm4474_vm1, %v4473_v0 }
 0x861   : > { %4048 = vmatprep.subr.mxu0 %v4473_v0 }
 0x90f   : > { %v1550_v21 = vpop.f32.mrf.mxu0 }
 0x911   : > { %v3987_v23 = vpop.f32.mrf.mxu0 }
 0x913   : > { %v1625_v24 = vpop.f32.mrf.mxu1 }
 0x914   : > { %v1626_v25 = vadd.f32 %v1625_v24, %v1550_v21 }
 0x915   : > { %v3998_v26 = vpop.f32.mrf.mxu1 }
 0x916   : > { %v1629_v34 = vadd.f32 %v4794_v43, %v1626_v25 }
 0x917   : > { %v1734_v36 = vpop.f32.mrf.mxu0  ;;  %v1807_v37 = vpop.f32.mrf.mxu1 }
 0x918   : > { %4289 = vtanh.f32 %v1629_v34  ;;  %v1808_v38 = vadd.f32 %v1807_v37, %v1734_v36  ;;  %v3695_v45 = vmul.f32 -1.442695, %v1629_v34 }
 0x919   : > { %v4009_v39 = vpop.f32.mrf.mxu0  ;;  %v4014_v40 = vpop.f32.mrf.mxu1 }
 0x91a   : > { %v1811_v41 = vadd.f32 %v4684_v10, %v1808_v38 }
 0x91c   : > { %4291 = vtanh.f32 %v1811_v41  ;;  %v3701_v46 = vmul.f32 -1.442695, %v1811_v41 }
 0x91d   : > { %4293 = vpow2.f32 %v3695_v45 }
 0x91e   : > { %4295 = vpow2.f32 %v3701_v46 }
 0x925   : > { %v4290_v42 = vpop.eup %4289 }
 0x926   : > { %1639 = vrot.lane.b32.xlu0 %v4290_v42, %s4475_s25 }
 0x929   : > { %v4292_v44 = vpop.eup %4291 }
 0x92a   : > { %1821 = vrot.lane.b32.xlu1 %v4292_v44, %s4475_s25  ;;  %v4294_v47 = vpop.eup %4293 }
 0x92b   : > { %v1633_v48 = vadd.f32 1.0, %v4294_v47  ;;  %v4296_v49 = vpop.eup %4295 }
 0x92c   : > { %v1815_v50 = vadd.f32 1.0, %v4296_v49 }
 0x92d   : > { %4297 = vrcp.f32 %v1633_v48 }
 0x92e   : > { %4299 = vrcp.f32 %v1815_v50 }
 0x93a   : > { %v4298_v51 = vpop.eup %4297 }
 0x93b   : > { %v4300_v54 = vpop.eup %4299  ;;  %v1637_v57 = vmul.f32 %v4298_v51, %v4864_v7 }
 0x93c   : > { %v1819_v60 = vmul.f32 %v4300_v54, %v4868_v11 }
 0x998   : > { %v1640_v52 = vpop.permute.xlu0 %1639 }
 0x999   : > { %v1642_v53 = vmul.f32 %v4298_v51, %v1640_v52 }
 0x99b   : > { %1644 = vrot.lane.b32.xlu0 %v1642_v53, %s4475_s25 }
 0x99c   : > { %v1822_v55 = vpop.permute.xlu1 %1821 }
 0x99d   : > { %v1824_v56 = vmul.f32 %v4300_v54, %v1822_v55 }
 0x99f   : > { %1826 = vrot.lane.b32.xlu1 %v1824_v56, %s4475_s25 }
 0xa0d   : > { %v1645_v58 = vpop.permute.xlu0 %1644 }
 0xa0e   : > { %v4925_v59 = vadd.f32 %v1645_v58, %v1637_v57 }
 0xa10   : > { %4301 = vtanh.f32 %v4925_v59 }
 0xa11   : > { %v1827_v61 = vpop.permute.xlu1 %1826 }
 0xa12   : > { %v4929_v62 = vadd.f32 %v1827_v61, %v1819_v60 }
 0xa14   : > { %4303 = vtanh.f32 %v4929_v62 }
 0xa1d   : > { %v4302_v63 = vpop.eup %4301 }
 0xa1e   : > { %1650 = vrot.lane.b32.xlu0 %v4302_v63, %s4475_s25 }
 0xa21   : > { %v4304_v4 = vpop.eup %4303 }
 0xa22   : > { %1832 = vrot.lane.b32.xlu1 %v4304_v4, %s4475_s25 }
 0xa90   : > { %v1651_v8 = vpop.permute.xlu0 %1650 }
 0xa91   : > { %v4934_v7 = vmul.f32 %v4298_v51, %v1651_v8 }
 0xa93   : > { %1837 = vrot.lane.b32.xlu0 %v4934_v7, %s4476_s20 }
 0xa94   : > { %v1833_v9 = vpop.permute.xlu1 %1832 }
 0xa95   : > { %v1835_v11 = vmul.f32 %v4300_v54, %v1833_v9  ;;  %v3715_v9 = vld [vmem:[%s4641_s19 + $0x28] sm:$0xff] }
 0xa97   : > { %1912 = vrot.lane.b32.xlu1 %v1835_v11, %s4476_s20 }
 0xb05   : > { %v1838_v12 = vpop.permute.xlu0 %1837 }
 0xb06   : > { %4024 = vmatmul.mubr.msk.f32.vlgmr.msra.gmra.mxu1 %vm529_vm0, %v1838_v12 }
 0xb07   : > { %4038 = vmatpush3.msra.mxu1 %v4644_v1  ;;  %4045 = vmatprep.mubr.msk.f32.mxu1 %vm4474_vm1, %v4473_v0 }
 0xb08   : > { %4039 = vmatprep.subr.mxu1 %v4473_v0 }
 0xb09   : > { %4040 = vmatpush3.msra.mxu1 %v4647_v2  ;;  %v1913_v13 = vpop.permute.xlu1 %1912 }
 0xb0a   : > { %4041 = vmatprep.subr.mxu1 %v4473_v0  ;;  %4035 = vmatmul.mubr.msk.f32.vlgmr.msra.gmra.mxu0 %vm529_vm0, %v1913_v13 }
 0xb0b   : > { %4042 = vmatpush3.msra.mxu1 %v4657_v5  ;;  %4049 = vmatpush3.msk.msra.mxu0 %vm634_vm2, %v4652_v3 }
 0xb0c   : > { %4043 = vmatprep.subr.mxu1 %v4473_v0  ;;  %4050 = vmatprep.mubr.msk.f32.mxu0 %vm4474_vm1, %v4473_v0 }
 0xb0d   : > { %4044 = vmatpush3.msra.mxu1 %v4665_v6  ;;  %4053 = vmatprep.subr.mxu0 %v4473_v0 }
 0xb0e   : > { %4046 = vmatmul.mubr.msk.f32.vlgmr.msra.gmra.mxu1 %vm529_vm0, %v1913_v13  ;;  %4051 = vmatmul.mubr.msk.f32.vlgmr.msra.gmra.mxu0 %vm630_vm3, %v3706_v14 }
 0xb0f   : > { %4054 = vmatpush3.msra.mxu0 %v4706_v27  ;;  %4064 = vmatprep.subr.mxu1 %v4473_v0 }
 0xb10   : > { %4055 = vmatprep.subr.mxu0 %v4473_v0  ;;  %4065 = vmatpush3.msra.mxu1 %v4713_v29 }
 0xb11   : > { %4056 = vmatpush3.msra.mxu0 %v4709_v28  ;;  %4066 = vmatprep.subr.mxu1 %v4473_v0 }
 0xb12   : > { %4057 = vmatprep.subr.mxu0 %v4473_v0  ;;  %4067 = vmatpush3.msra.mxu1 %v4716_v30 }
 0xb13   : > { %4058 = vmatpush3.msra.mxu0 %v4720_v31  ;;  %4061 = vmatprep.mubr.msk.f32.mxu0 %vm4474_vm1, %v4473_v0 }
 0xb14   : > { %4059 = vmatprep.subr.mxu0 %v4473_v0  ;;  %4068 = vmatprep.subr.mxu1 %v4473_v0 }
 0xb15   : > { %4060 = vmatpush3.msra.mxu0 %v4730_v33  ;;  %4069 = vmatpush3.msra.mxu1 %v4726_v32 }
 0xb16   : > { %4075 = vmatprep.subr.mxu0 %v4473_v0  ;;  %4070 = vmatprep.subr.mxu1 %v4473_v0 }
 0xb17   : > { %4071 = vmatpush3.msra.mxu1 %v4738_v35  ;;  %4072 = vmatprep.mubr.msk.f32.mxu1 %vm4474_vm1, %v4473_v0 }
 0xb18   : > { %4086 = vmatprep.subr.mxu1 %v4473_v0 }
 0xbc6   : > { %v1907_v16 = vpop.f32.mrf.mxu1 }
 0xbc8   : > { %v4025_v17 = vpop.f32.mrf.mxu1 }
 0xbca   : > { %v1982_v18 = vpop.f32.mrf.mxu0 }
 0xbcb   : > { %v1983_v19 = vadd.f32 %v1982_v18, %v1907_v16 }
 0xbcc   : > { %v4036_v20 = vpop.f32.mrf.mxu0 }
 0xbcd   : > { %v1986_v21 = vadd.f32 %v4794_v43, %v1983_v19 }
 0xbce   : > { %v2091_v23 = vpop.f32.mrf.mxu1  ;;  %v2164_v24 = vpop.f32.mrf.mxu0 }
 0xbcf   : > { %4305 = vtanh.f32 %v1986_v21  ;;  %v2165_v25 = vadd.f32 %v2164_v24, %v2091_v23  ;;  %v3704_v39 = vmul.f32 -1.442695, %v1986_v21 }
 0xbd0   : > { %v4047_v26 = vpop.f32.mrf.mxu1  ;;  %v4052_v34 = vpop.f32.mrf.mxu0 }
 0xbd1   : > { %v2168_v36 = vadd.f32 %v4684_v10, %v2165_v25 }
 0xbd3   : > { %4307 = vtanh.f32 %v2168_v36  ;;  %v3710_v40 = vmul.f32 -1.442695, %v2168_v36 }
 0xbd4   : > { %4309 = vpow2.f32 %v3704_v39 }
 0xbd5   : > { %4311 = vpow2.f32 %v3710_v40 }
 0xbdc   : > { %v4306_v37 = vpop.eup %4305 }
 0xbdd   : > { %1996 = vrot.lane.b32.xlu0 %v4306_v37, %s4475_s25 }
 0xbe0   : > { %v4308_v38 = vpop.eup %4307 }
 0xbe1   : > { %2178 = vrot.lane.b32.xlu1 %v4308_v38, %s4475_s25  ;;  %v4310_v41 = vpop.eup %4309 }
 0xbe2   : > { %v1990_v42 = vadd.f32 1.0, %v4310_v41  ;;  %v4312_v44 = vpop.eup %4311 }
 0xbe3   : > { %v2172_v45 = vadd.f32 1.0, %v4312_v44 }
 0xbe4   : > { %4313 = vrcp.f32 %v1990_v42 }
 0xbe5   : > { %4315 = vrcp.f32 %v2172_v45 }
 0xbf1   : > { %v4314_v46 = vpop.eup %4313 }
 0xbf2   : > { %v4316_v49 = vpop.eup %4315  ;;  %v1994_v52 = vmul.f32 %v4314_v46, %v4925_v59 }
 0xbf3   : > { %v2176_v55 = vmul.f32 %v4316_v49, %v4929_v62 }
 0xc4f   : > { %v1997_v47 = vpop.permute.xlu0 %1996 }
 0xc50   : > { %v1999_v48 = vmul.f32 %v4314_v46, %v1997_v47 }
 0xc52   : > { %2001 = vrot.lane.b32.xlu0 %v1999_v48, %s4475_s25 }
 0xc53   : > { %v2179_v50 = vpop.permute.xlu1 %2178 }
 0xc54   : > { %v2181_v51 = vmul.f32 %v4316_v49, %v2179_v50 }
 0xc56   : > { %2183 = vrot.lane.b32.xlu1 %v2181_v51, %s4475_s25 }
 0xcc4   : > { %v2002_v53 = vpop.permute.xlu0 %2001 }
 0xcc5   : > { %v4986_v54 = vadd.f32 %v2002_v53, %v1994_v52 }
 0xcc7   : > { %4317 = vtanh.f32 %v4986_v54 }
 0xcc8   : > { %v2184_v56 = vpop.permute.xlu1 %2183 }
 0xcc9   : > { %v4990_v57 = vadd.f32 %v2184_v56, %v2176_v55  ;;  %v5063_v55 = vld [vmem:[%s4634_s30 + $0x18] sm:$0xff]  ;;  %v5070_v56 = vld [vmem:[%s4634_s30 + $0x10] sm:$0xff] }
 0xccb   : > { %4319 = vtanh.f32 %v4990_v57 }
 0xcd4   : > { %v4318_v58 = vpop.eup %4317 }
 0xcd5   : > { %2007 = vrot.lane.b32.xlu0 %v4318_v58, %s4475_s25  ;;  %v5076_v58 = vld [vmem:[%s4634_s30 + $0x8] sm:$0xff] }
 0xcd8   : > { %v4320_v60 = vpop.eup %4319 }
 0xcd9   : > { %2189 = vrot.lane.b32.xlu1 %v4320_v60, %s4475_s25  ;;  %v5081_v60 = vld [vmem:[%s403_s26] sm:$0xf] }
 0xd47   : > { %v2008_v61 = vpop.permute.xlu0 %2007 }
 0xd48   : > { %v4995_v59 = vmul.f32 %v4314_v46, %v2008_v61  ;;  %v3724_v61 = vld [vmem:[%s4641_s19 + $0x30] sm:$0xff] }
 0xd4a   : > { %2194 = vrot.lane.b32.xlu0 %v4995_v59, %s4476_s20 }
 0xd4b   : > { %v2190_v63 = vpop.permute.xlu1 %2189 }
 0xd4c   : > { %v2192_v62 = vmul.f32 %v4316_v49, %v2190_v63  ;;  %v5090_v63 = vld [vmem:[%s4634_s30] sm:$0xff]  ;;  %s511_s30 = scalar_lea.vmem %s5298_s7, %s5312_s12 }
 0xd4e   : > { %2269 = vrot.lane.b32.xlu1 %v2192_v62, %s4476_s20 }
 0xdbc   : > { %v2195_v4 = vpop.permute.xlu0 %2194 }
 0xdbd   : > { %4062 = vmatmul.mubr.msk.f32.vlgmr.msra.gmra.mxu0 %vm529_vm0, %v2195_v4 }
 0xdbe   : > { %4076 = vmatpush3.msra.mxu0 %v4644_v1  ;;  %4083 = vmatprep.mubr.msk.f32.mxu0 %vm4474_vm1, %v4473_v0 }
 0xdbf   : > { %4077 = vmatprep.subr.mxu0 %v4473_v0 }
 0xdc0   : > { %4078 = vmatpush3.msra.mxu0 %v4647_v2  ;;  %v2270_v8 = vpop.permute.xlu1 %2269 }
 0xdc1   : > { %4079 = vmatprep.subr.mxu0 %v4473_v0  ;;  %4073 = vmatmul.mubr.msk.f32.vlgmr.msra.gmra.mxu1 %vm529_vm0, %v2270_v8 }
 0xdc2   : > { %4080 = vmatpush3.msra.mxu0 %v4657_v5  ;;  %4087 = vmatpush3.msk.msra.mxu1 %vm634_vm2, %v4652_v3 }
 0xdc3   : > { %4081 = vmatprep.subr.mxu0 %v4473_v0  ;;  %4088 = vmatprep.mubr.msk.f32.mxu1 %vm4474_vm1, %v4473_v0 }
 0xdc4   : > { %4082 = vmatpush3.msra.mxu0 %v4665_v6  ;;  %4091 = vmatprep.subr.mxu1 %v4473_v0 }
 0xdc5   : > { %4084 = vmatmul.mubr.msk.f32.vlgmr.msra.gmra.mxu0 %vm529_vm0, %v2270_v8  ;;  %4089 = vmatmul.mubr.msk.f32.vlgmr.msra.gmra.mxu1 %vm630_vm3, %v3715_v9 }
 0xdc6   : > { %4092 = vmatpush3.msra.mxu1 %v4706_v27  ;;  %4102 = vmatprep.subr.mxu0 %v4473_v0 }
 0xdc7   : > { %4093 = vmatprep.subr.mxu1 %v4473_v0  ;;  %4103 = vmatpush3.msra.mxu0 %v4713_v29 }
 0xdc8   : > { %4094 = vmatpush3.msra.mxu1 %v4709_v28  ;;  %4104 = vmatprep.subr.mxu0 %v4473_v0 }
 0xdc9   : > { %4095 = vmatprep.subr.mxu1 %v4473_v0  ;;  %4105 = vmatpush3.msra.mxu0 %v4716_v30 }
 0xdca   : > { %4096 = vmatpush3.msra.mxu1 %v4720_v31  ;;  %4099 = vmatprep.mubr.msk.f32.mxu1 %vm4474_vm1, %v4473_v0 }
 0xdcb   : > { %4097 = vmatprep.subr.mxu1 %v4473_v0  ;;  %4106 = vmatprep.subr.mxu0 %v4473_v0 }
 0xdcc   : > { %4098 = vmatpush3.msra.mxu1 %v4730_v33  ;;  %4107 = vmatpush3.msra.mxu0 %v4726_v32 }
 0xdcd   : > { %4113 = vmatprep.subr.mxu1 %v4473_v0  ;;  %4108 = vmatprep.subr.mxu0 %v4473_v0 }
 0xdce   : > { %4109 = vmatpush3.msra.mxu0 %v4738_v35  ;;  %4110 = vmatprep.mubr.msk.f32.mxu0 %vm4474_vm1, %v4473_v0 }
 0xdcf   : > { %4124 = vmatprep.subr.mxu0 %v4473_v0 }
 0xe7d   : > { %v2264_v1 = vpop.f32.mrf.mxu0 }
 0xe7f   : > { %v4063_v2 = vpop.f32.mrf.mxu0 }
 0xe81   : > { %v2339_v3 = vpop.f32.mrf.mxu1 }
 0xe82   : > { %v2340_v5 = vadd.f32 %v2339_v3, %v2264_v1  ;;  %v5119_v1 = vld [vmem:[%s4681_s18] ss:$0 sm:$0xff] }
 0xe83   : > { %v4074_v6 = vpop.f32.mrf.mxu1 }
 0xe84   : > { %v2343_v11 = vadd.f32 %v4794_v43, %v2340_v5 }
 0xe85   : > { %v2448_v12 = vpop.f32.mrf.mxu0  ;;  %v2521_v13 = vpop.f32.mrf.mxu1 }
 0xe86   : > { %4321 = vtanh.f32 %v2343_v11  ;;  %v2522_v14 = vadd.f32 %v2521_v13, %v2448_v12  ;;  %v3713_v21 = vmul.f32 -1.442695, %v2343_v11 }
 0xe87   : > { %v4085_v16 = vpop.f32.mrf.mxu0  ;;  %v4090_v17 = vpop.f32.mrf.mxu1 }
 0xe88   : > { %v2525_v18 = vadd.f32 %v4684_v10, %v2522_v14 }
 0xe8a   : > { %4323 = vtanh.f32 %v2525_v18  ;;  %v3719_v23 = vmul.f32 -1.442695, %v2525_v18 }
 0xe8b   : > { %4325 = vpow2.f32 %v3713_v21 }
 0xe8c   : > { %4327 = vpow2.f32 %v3719_v23 }
 0xe93   : > { %v4322_v19 = vpop.eup %4321 }
 0xe94   : > { %2353 = vrot.lane.b32.xlu0 %v4322_v19, %s4475_s25 }
 0xe97   : > { %v4324_v20 = vpop.eup %4323 }
 0xe98   : > { %2535 = vrot.lane.b32.xlu1 %v4324_v20, %s4475_s25  ;;  %v4326_v24 = vpop.eup %4325 }
 0xe99   : > { %v2347_v25 = vadd.f32 1.0, %v4326_v24  ;;  %v4328_v26 = vpop.eup %4327 }
 0xe9a   : > { %v2529_v34 = vadd.f32 1.0, %v4328_v26 }
 0xe9b   : > { %4329 = vrcp.f32 %v2347_v25 }
 0xe9c   : > { %4331 = vrcp.f32 %v2529_v34 }
 0xea8   : > { %v4330_v36 = vpop.eup %4329 }
 0xea9   : > { %v4332_v38 = vpop.eup %4331  ;;  %v2351_v41 = vmul.f32 %v4330_v36, %v4986_v54 }
 0xeaa   : > { %v2533_v45 = vmul.f32 %v4332_v38, %v4990_v57 }
 0xf06   : > { %v2354_v37 = vpop.permute.xlu0 %2353 }
 0xf07   : > { %v2356_v10 = vmul.f32 %v4330_v36, %v2354_v37 }
 0xf09   : > { %2358 = vrot.lane.b32.xlu0 %v2356_v10, %s4475_s25 }
 0xf0a   : > { %v2536_v39 = vpop.permute.xlu1 %2535 }
 0xf0b   : > { %v2538_v40 = vmul.f32 %v4332_v38, %v2536_v39 }
 0xf0d   : > { %2540 = vrot.lane.b32.xlu1 %v2538_v40, %s4475_s25 }
 0xf7b   : > { %v2359_v42 = vpop.permute.xlu0 %2358 }
 0xf7c   : > { %v5047_v44 = vadd.f32 %v2359_v42, %v2351_v41 }
 0xf7e   : > { %4333 = vtanh.f32 %v5047_v44 }
 0xf7f   : > { %v2541_v46 = vpop.permute.xlu1 %2540 }
 0xf80   : > { %v5051_v47 = vadd.f32 %v2541_v46, %v2533_v45  ;;  %v4383_v45 = vld [vmem:[%s4697_s15 + $0x18] sm:$0xff] }
 0xf81   : > { %v4384_v46 = vld [vmem:[%s4703_s24 + $0x18] sm:$0xff] }
 0xf82   : > { %4335 = vtanh.f32 %v5051_v47 }
 0xf8b   : > { %v4334_v48 = vpop.eup %4333 }
 0xf8c   : > { %2364 = vrot.lane.b32.xlu0 %v4334_v48, %s4475_s25  ;;  %v4386_v48 = vld [vmem:[%s4697_s15 + $0x8] sm:$0xff] }
 0xf8f   : > { %v4336_v49 = vpop.eup %4335 }
 0xf90   : > { %2546 = vrot.lane.b32.xlu1 %v4336_v49, %s4475_s25  ;;  %v4387_v49 = vld [vmem:[%s4703_s24 + $0x10] sm:$0xff] }
 0xffe   : > { %v2365_v50 = vpop.permute.xlu0 %2364 }
 0xfff   : > { %v5056_v51 = vmul.f32 %v4330_v36, %v2365_v50  ;;  %v4388_v50 = vld [vmem:[%s4697_s15] sm:$0xff] }
0x1001   : > { %2551 = vrot.lane.b32.xlu0 %v5056_v51, %s4476_s20 }
0x1002   : > { %v2547_v52 = vpop.permute.xlu1 %2546 }
0x1003   : > { %v2549_v53 = vmul.f32 %v4332_v38, %v2547_v52  ;;  %v4389_v52 = vld [vmem:[%s4703_s24 + $0x8] sm:$0xff] }
0x1005   : > { %2626 = vrot.lane.b32.xlu1 %v2549_v53, %s4476_s20  ;;  %v4390_v53 = vld [vmem:[%s4703_s24] sm:$0xff] }
0x1073   : > { %v2552_v54 = vpop.permute.xlu0 %2551 }
0x1074   : > { %4100 = vmatmul.mubr.msk.f32.vlgmr.msra.gmra.mxu1 %vm529_vm0, %v2552_v54 }
0x1075   : > { %4114 = vmatpush3.msra.mxu1 %v5063_v55  ;;  %4121 = vmatprep.mubr.msk.f32.mxu1 %vm4474_vm1, %v4473_v0 }
0x1076   : > { %4115 = vmatprep.subr.mxu1 %v4473_v0 }
0x1077   : > { %4116 = vmatpush3.msra.mxu1 %v5070_v56  ;;  %v2627_v57 = vpop.permute.xlu1 %2626 }
0x1078   : > { %4117 = vmatprep.subr.mxu1 %v4473_v0  ;;  %4111 = vmatmul.mubr.msk.f32.vlgmr.msra.gmra.mxu0 %vm529_vm0, %v2627_v57 }
0x1079   : > { %4118 = vmatpush3.msra.mxu1 %v5076_v58  ;;  %4125 = vmatpush3.msk.msra.mxu0 %vm634_vm2, %v5081_v60 }
0x107a   : > { %4119 = vmatprep.subr.mxu1 %v4473_v0  ;;  %4126 = vmatprep.mubr.msk.f32.mxu0 %vm4474_vm1, %v4473_v0 }
0x107b   : > { %4120 = vmatpush3.msra.mxu1 %v5090_v63  ;;  %4129 = vmatprep.subr.mxu0 %v4473_v0 }
0x107c   : > { %4122 = vmatmul.mubr.msk.f32.vlgmr.msra.gmra.mxu1 %vm529_vm0, %v2627_v57  ;;  %4127 = vmatmul.mubr.msk.f32.vlgmr.msra.gmra.mxu0 %vm630_vm3, %v3724_v61 }
0x107d   : > { %4130 = vmatpush3.msra.mxu0 %v4706_v27  ;;  %4140 = vmatprep.subr.mxu1 %v4473_v0 }
0x107e   : > { %4131 = vmatprep.subr.mxu0 %v4473_v0  ;;  %4141 = vmatpush3.msra.mxu1 %v4713_v29 }
0x107f   : > { %4132 = vmatpush3.msra.mxu0 %v4709_v28  ;;  %4142 = vmatprep.subr.mxu1 %v4473_v0 }
0x1080   : > { %4133 = vmatprep.subr.mxu0 %v4473_v0  ;;  %4143 = vmatpush3.msra.mxu1 %v4716_v30 }
0x1081   : > { %4134 = vmatpush3.msra.mxu0 %v4720_v31  ;;  %4137 = vmatprep.mubr.msk.f32.mxu0 %vm4474_vm1, %v4473_v0 }
0x1082   : > { %4135 = vmatprep.subr.mxu0 %v4473_v0  ;;  %4144 = vmatprep.subr.mxu1 %v4473_v0 }
0x1083   : > { %4136 = vmatpush3.msra.mxu0 %v4730_v33  ;;  %4145 = vmatpush3.msra.mxu1 %v4726_v32 }
0x1084   : > { %4151 = vmatprep.subr.mxu0 %v4473_v0  ;;  %4146 = vmatprep.subr.mxu1 %v4473_v0 }
0x1085   : > { %4147 = vmatpush3.msra.mxu1 %v4738_v35  ;;  %4148 = vmatprep.mubr.msk.f32.mxu1 %vm4474_vm1, %v4473_v0 }
0x1086   : > { %4162 = vmatprep.subr.mxu1 %v4473_v0 }
0x1134   : > { %v2621_v27 = vpop.f32.mrf.mxu1 }
0x1136   : > { %v4101_v28 = vpop.f32.mrf.mxu1 }
0x1138   : > { %v2696_v29 = vpop.f32.mrf.mxu0 }
0x1139   : > { %v2697_v30 = vadd.f32 %v2696_v29, %v2621_v27 }
0x113a   : > { %v4112_v31 = vpop.f32.mrf.mxu0 }
0x113b   : > { %v2700_v33 = vadd.f32 %v4794_v43, %v2697_v30 }
0x113c   : > { %v2805_v32 = vpop.f32.mrf.mxu1  ;;  %v2878_v62 = vpop.f32.mrf.mxu0 }
0x113d   : > { %4337 = vtanh.f32 %v2700_v33  ;;  %v2879_v4 = vadd.f32 %v2878_v62, %v2805_v32  ;;  %v3722_v5 = vmul.f32 -1.442695, %v2700_v33 }
0x113e   : > { %v4123_v8 = vpop.f32.mrf.mxu1  ;;  %v4128_v9 = vpop.f32.mrf.mxu0 }
0x113f   : > { %v2882_v35 = vadd.f32 %v5119_v1, %v2879_v4 }
0x1141   : > { %4339 = vtanh.f32 %v2882_v35  ;;  %v3728_v43 = vmul.f32 -1.442695, %v2882_v35 }
0x1142   : > { %4341 = vpow2.f32 %v3722_v5 }
0x1143   : > { %4343 = vpow2.f32 %v3728_v43 }
0x114a   : > { %v4338_v2 = vpop.eup %4337 }
0x114b   : > { %2710 = vrot.lane.b32.xlu0 %v4338_v2, %s4475_s25 }
0x114e   : > { %v4340_v3 = vpop.eup %4339 }
0x114f   : > { %2892 = vrot.lane.b32.xlu1 %v4340_v3, %s4475_s25  ;;  %v4342_v6 = vpop.eup %4341 }
0x1150   : > { %v2704_v11 = vadd.f32 1.0, %v4342_v6  ;;  %v4344_v12 = vpop.eup %4343 }
0x1151   : > { %v2886_v13 = vadd.f32 1.0, %v4344_v12 }
0x1152   : > { %4345 = vrcp.f32 %v2704_v11 }
0x1153   : > { %4347 = vrcp.f32 %v2886_v13 }
0x115f   : > { %v4346_v14 = vpop.eup %4345 }
0x1160   : > { %v4348_v18 = vpop.eup %4347  ;;  %v2708_v21 = vmul.f32 %v4346_v14, %v5047_v44  ;;  %v3733_v44 = vld [vmem:[%s4641_s19 + $0x38] sm:$0xff] }
0x1161   : > { %v2890_v25 = vmul.f32 %v4348_v18, %v5051_v47  ;;  %v4385_v47 = vld [vmem:[%s4697_s15 + $0x10] sm:$0xff]  ;;  %s514_s15 = scalar_lea.vmem %s5299_s8, %s5312_s12  ;;  %s4477_s12 = smov 96  }
0x11bd   : > { %v2711_v16 = vpop.permute.xlu0 %2710 }
0x11be   : > { %v2713_v17 = vmul.f32 %v4346_v14, %v2711_v16 }
0x11c0   : > { %2715 = vrot.lane.b32.xlu0 %v2713_v17, %s4475_s25 }
0x11c1   : > { %v2893_v19 = vpop.permute.xlu1 %2892 }
0x11c2   : > { %v2895_v20 = vmul.f32 %v4348_v18, %v2893_v19 }
0x11c4   : > { %2897 = vrot.lane.b32.xlu1 %v2895_v20, %s4475_s25 }
0x1232   : > { %v2716_v23 = vpop.permute.xlu0 %2715 }
0x1233   : > { %v5127_v24 = vadd.f32 %v2716_v23, %v2708_v21 }
0x1235   : > { %4349 = vtanh.f32 %v5127_v24 }
0x1236   : > { %v2898_v26 = vpop.permute.xlu1 %2897 }
0x1237   : > { %v5131_v34 = vadd.f32 %v2898_v26, %v2890_v25 }
0x1239   : > { %4351 = vtanh.f32 %v5131_v34 }
0x1242   : > { %v4350_v36 = vpop.eup %4349 }
0x1243   : > { %2721 = vrot.lane.b32.xlu0 %v4350_v36, %s4475_s25 }
0x1246   : > { %v4352_v37 = vpop.eup %4351 }
0x1247   : > { %2903 = vrot.lane.b32.xlu1 %v4352_v37, %s4475_s25 }
0x12b5   : > { %v2722_v10 = vpop.permute.xlu0 %2721 }
0x12b6   : > { %v5136_v38 = vmul.f32 %v4346_v14, %v2722_v10 }
0x12b8   : > { %2908 = vrot.lane.b32.xlu0 %v5136_v38, %s4476_s20 }
0x12b9   : > { %v2904_v39 = vpop.permute.xlu1 %2903 }
0x12ba   : > { %v2906_v40 = vmul.f32 %v4348_v18, %v2904_v39 }
0x12bc   : > { %2983 = vrot.lane.b32.xlu1 %v2906_v40, %s4476_s20 }
0x132a   : > { %v2909_v41 = vpop.permute.xlu0 %2908 }
0x132b   : > { %4138 = vmatmul.mubr.msk.f32.vlgmr.msra.gmra.mxu0 %vm529_vm0, %v2909_v41 }
0x132c   : > { %4152 = vmatpush3.msra.mxu0 %v5063_v55  ;;  %4159 = vmatprep.mubr.msk.f32.mxu0 %vm4474_vm1, %v4473_v0 }
0x132d   : > { %4153 = vmatprep.subr.mxu0 %v4473_v0 }
0x132e   : > { %4154 = vmatpush3.msra.mxu0 %v5070_v56  ;;  %v2984_v42 = vpop.permute.xlu1 %2983 }
0x132f   : > { %4155 = vmatprep.subr.mxu0 %v4473_v0  ;;  %4149 = vmatmul.mubr.msk.f32.vlgmr.msra.gmra.mxu1 %vm529_vm0, %v2984_v42 }
0x1330   : > { %4156 = vmatpush3.msra.mxu0 %v5076_v58  ;;  %4163 = vmatpush3.msk.msra.mxu1 %vm634_vm2, %v5081_v60  ;;  %v4391_v60 = vld [vmem:[%s4791_s17] ss:$0 sm:$0xff] }
0x1331   : > { %4157 = vmatprep.subr.mxu0 %v4473_v0  ;;  %4164 = vmatprep.mubr.msk.f32.mxu1 %vm4474_vm1, %v4473_v0 }
0x1332   : > { %4158 = vmatpush3.msra.mxu0 %v5090_v63  ;;  %4167 = vmatprep.subr.mxu1 %v4473_v0 }
0x1333   : > { %4160 = vmatmul.mubr.msk.f32.vlgmr.msra.gmra.mxu0 %vm529_vm0, %v2984_v42  ;;  %4165 = vmatmul.mubr.msk.f32.vlgmr.msra.gmra.mxu1 %vm630_vm3, %v3733_v44  ;;  %v3677_v42 = vld [vmem:[%s511_s30] ss:$0 sm:$0xff] }
0x1334   : > { %4168 = vmatpush3.msra.mxu1 %v4383_v45  ;;  %4178 = vmatprep.subr.mxu0 %v4473_v0 }
0x1335   : > { %4169 = vmatprep.subr.mxu1 %v4473_v0  ;;  %4179 = vmatpush3.msra.mxu0 %v4384_v46 }
0x1336   : > { %4170 = vmatpush3.msra.mxu1 %v4385_v47  ;;  %4180 = vmatprep.subr.mxu0 %v4473_v0 }
0x1337   : > { %4171 = vmatprep.subr.mxu1 %v4473_v0  ;;  %4175 = vmatprep.mubr.msk.f32.mxu1 %vm4474_vm1, %v4473_v0 }
0x1338   : > { %4172 = vmatpush3.msra.mxu1 %v4386_v48  ;;  %4181 = vmatpush3.msra.mxu0 %v4387_v49 }
0x1339   : > { %4173 = vmatprep.subr.mxu1 %v4473_v0  ;;  %4182 = vmatprep.subr.mxu0 %v4473_v0 }
0x133a   : > { %4174 = vmatpush3.msra.mxu1 %v4388_v50  ;;  %4183 = vmatpush3.msra.mxu0 %v4389_v52 }
0x133b   : > { %4184 = vmatprep.subr.mxu0 %v4473_v0  ;;  %4186 = vmatprep.mubr.msk.f32.mxu0 %vm4474_vm1, %v4473_v0 }
0x133c   : > { %4185 = vmatpush3.msra.mxu0 %v4390_v53 }
0x13eb   : > { %v2978_v54 = vpop.f32.mrf.mxu0 }
0x13ed   : > { %v4139_v55 = vpop.f32.mrf.mxu0 }
0x13ef   : > { %v3053_v56 = vpop.f32.mrf.mxu1 }
0x13f0   : > { %v3054_v57 = vadd.f32 %v3053_v56, %v2978_v54 }
0x13f1   : > { %v4150_v58 = vpop.f32.mrf.mxu1 }
0x13f2   : > { %v3057_v61 = vadd.f32 %v4391_v60, %v3054_v57 }
0x13f3   : > { %v3162_v63 = vpop.f32.mrf.mxu0  ;;  %v3235_v27 = vpop.f32.mrf.mxu1 }
0x13f4   : > { %4353 = vtanh.f32 %v3057_v61  ;;  %v3236_v28 = vadd.f32 %v3235_v27, %v3162_v63  ;;  %v3731_v32 = vmul.f32 -1.442695, %v3057_v61 }
0x13f5   : > { %v4161_v29 = vpop.f32.mrf.mxu0  ;;  %v4166_v30 = vpop.f32.mrf.mxu1 }
0x13f6   : > { %v3239_v31 = vadd.f32 %v5119_v1, %v3236_v28 }
0x13f8   : > { %4355 = vtanh.f32 %v3239_v31  ;;  %v3737_v62 = vmul.f32 -1.442695, %v3239_v31 }
0x13f9   : > { %4357 = vpow2.f32 %v3731_v32 }
0x13fa   : > { %4359 = vpow2.f32 %v3737_v62 }
0x1401   : > { %v4354_v33 = vpop.eup %4353 }
0x1402   : > { %3067 = vrot.lane.b32.xlu0 %v4354_v33, %s4475_s25 }
0x1405   : > { %v4356_v0 = vpop.eup %4355 }
0x1406   : > { %3249 = vrot.lane.b32.xlu1 %v4356_v0, %s4475_s25  ;;  %v4358_v4 = vpop.eup %4357 }
0x1407   : > { %v3061_v8 = vadd.f32 1.0, %v4358_v4  ;;  %v4360_v9 = vpop.eup %4359 }
0x1408   : > { %v3243_v35 = vadd.f32 1.0, %v4360_v9 }
0x1409   : > { %4361 = vrcp.f32 %v3061_v8 }
0x140a   : > { %4363 = vrcp.f32 %v3243_v35 }
0x1416   : > { %v4362_v2 = vpop.eup %4361 }
0x1417   : > { %v4364_v5 = vpop.eup %4363  ;;  %v3065_v11 = vmul.f32 %v4362_v2, %v5127_v24 }
0x1418   : > { %v3247_v14 = vmul.f32 %v4364_v5, %v5131_v34 }
0x1474   : > { %v3068_v3 = vpop.permute.xlu0 %3067 }
0x1475   : > { %v3070_v1 = vmul.f32 %v4362_v2, %v3068_v3 }
0x1477   : > { %3072 = vrot.lane.b32.xlu0 %v3070_v1, %s4475_s25 }
0x1478   : > { %v3250_v43 = vpop.permute.xlu1 %3249 }
0x1479   : > { %v3252_v6 = vmul.f32 %v4364_v5, %v3250_v43 }
0x147b   : > { %3254 = vrot.lane.b32.xlu1 %v3252_v6, %s4475_s25 }
0x14e9   : > { %v3073_v12 = vpop.permute.xlu0 %3072 }
0x14ea   : > { %v3075_v13 = vadd.f32 %v3073_v12, %v3065_v11 }
0x14ec   : > { %4365 = vtanh.f32 %v3075_v13 }
0x14ed   : > { %v3255_v16 = vpop.permute.xlu1 %3254 }
0x14ee   : > { %v5187_v17 = vadd.f32 %v3255_v16, %v3247_v14 }
0x14f0   : > { %4367 = vtanh.f32 %v5187_v17 }
0x14f9   : > { %v4366_v18 = vpop.eup %4365 }
0x14fa   : > { %3078 = vrot.lane.b32.xlu0 %v4366_v18, %s4475_s25 }
0x14fd   : > { %v4368_v19 = vpop.eup %4367 }
0x14fe   : > { %3260 = vrot.lane.b32.xlu1 %v4368_v19, %s4475_s25 }
0x156c   : > { %v3079_v20 = vpop.permute.xlu0 %3078 }
0x156d   : > { %v5192_v21 = vmul.f32 %v4362_v2, %v3079_v20 }
0x156f   : > { %3265 = vrot.lane.b32.xlu0 %v5192_v21, %s4476_s20 }
0x1570   : > { %v3261_v23 = vpop.permute.xlu1 %3260 }
0x1571   : > { %v3263_v24 = vmul.f32 %v4364_v5, %v3261_v23 }
0x1573   : > { %3340 = vrot.lane.b32.xlu1 %v3263_v24, %s4476_s20 }
0x15e1   : > { %v3266_v25 = vpop.permute.xlu0 %3265 }
0x15e2   : > { %4176 = vmatmul.mubr.msk.f32.vlgmr.msra.gmra.mxu1 %vm529_vm0, %v3266_v25 }
0x15e5   : > { %v3341_v26 = vpop.permute.xlu1 %3340 }
0x15e6   : > { %3452 = vst.msk [vmem:[#allocation2] sm:$0xff] %vm529_vm0, %v3341_v26  ;;  %4187 = vmatmul.mubr.msk.f32.vlgmr.msra.gmra.mxu0 %vm529_vm0, %v3341_v26 }
0x16a2   : > { %v3335_v34 = vpop.f32.mrf.mxu1 }
0x16a4   : > { %v4177_v36 = vpop.f32.mrf.mxu1 }
0x16a6   : > { %v3410_v37 = vpop.f32.mrf.mxu0 }
0x16a7   : > { %v3411_v10 = vadd.f32 %v3410_v37, %v3335_v34 }
0x16a8   : > { %v4188_v39 = vpop.f32.mrf.mxu0 }
0x16a9   : > { %v3414_v40 = vadd.f32 %v4391_v60, %v3411_v10 }
0x16ab   : > { %4369 = vtanh.f32 %v3414_v40  ;;  %v3740_v44 = vmul.f32 -1.442695, %v3414_v40 }
0x16ad   : > { %4371 = vpow2.f32 %v3740_v44 }
0x16b8   : > { %v4370_v41 = vpop.eup %4369 }
0x16b9   : > { %3424 = vrot.lane.b32.xlu0 %v4370_v41, %s4475_s25 }
0x16ba   : > { %v4372_v45 = vpop.eup %4371 }
0x16bb   : > { %v3418_v46 = vadd.f32 1.0, %v4372_v45 }
0x16bd   : > { %931 = vrot.lane.b32.xlu0 %v3677_v42, %s4476_s20  ;;  %4373 = vrcp.f32 %v3418_v46 }
0x16ca   : > { %v4374_v47 = vpop.eup %4373 }
0x16cb   : > { %v3422_v57 = vmul.f32 %v4374_v47, %v3075_v13 }
0x172b   : > { %v3425_v48 = vpop.permute.xlu0 %3424 }
0x172c   : > { %v3427_v49 = vmul.f32 %v4374_v47, %v3425_v48 }
0x172e   : > { %3429 = vrot.lane.b32.xlu1 %v3427_v49, %s4475_s25 }
0x172f   : > { %v932_v50 = vpop.permute.xlu0 %931 }
0x1730   : > { %v934_v52 = vmul.f32 %v932_v50, %v4812_v22  ;;  %v1297_v53 = vmul.f32 %v4873_v15, %v932_v50  ;;  %v1654_v63 = vmul.f32 %v4934_v7, %v932_v50  ;;  %v5220_v15 = vld [vmem:[%s514_s15] ss:$0 sm:$0xff]  ;;  %v2011_v32 = vmul.f32 %v4995_v59, %v932_v50 }
0x1731   : > { %v2368_v62 = vmul.f32 %v5056_v51, %v932_v50  ;;  %v2725_v4 = vmul.f32 %v5136_v38, %v932_v50  ;;  %v3082_v35 = vmul.f32 %v5192_v21, %v932_v50 }
0x1732   : > { %936 = vrot.lane.b32.xlu1 %v934_v52, %s4476_s20 }
0x1736   : > { %1299 = vrot.lane.b32.xlu1 %v1297_v53, %s4476_s20 }
0x17a0   : > { %v3430_v54 = vpop.permute.xlu1 %3429 }
0x17a1   : > { %v3432_v60 = vadd.f32 %v3430_v54, %v3422_v57 }
0x17a3   : > { %4375 = vtanh.f32 %v3432_v60 }
0x17a4   : > { %v937_v55 = vpop.permute.xlu1 %936 }
0x17a5   : > { %v939_v56 = vsel %vm529_vm0, %v937_v55, 0.0 }
0x17a6   : > { %940 = vadd.xlane.f32.xlu0 %v939_v56 }
0x17a8   : > { %v1300_v58 = vpop.permute.xlu1 %1299 }
0x17a9   : > { %v1302_v61 = vsel %vm529_vm0, %v1300_v58, 0.0 }
0x17aa   : > { %1303 = vadd.xlane.f32.xlu1 %v1302_v61 }
0x17b0   : > { %v4376_v22 = vpop.eup %4375 }
0x17bb   : > { %3435 = vrot.lane.b32.xlu1 %v4376_v22, %s4475_s25 }
0x17bc   : > { %1656 = vrot.lane.b32.xlu0 %v1654_v63, %s4476_s20 }
0x182f   : > { %v941_v27 = vpop.xlane.xlu0 %940 }
0x1830   : > { %v948_v28 = vadd.f32 %v5220_v15, %v941_v27 }
0x1832   : > { %v949_v7 = vmax.f32 %v948_v28, 0.0 }
0x1833   : > { %v1657_v29 = vpop.permute.xlu0 %1656  ;;  %v1304_v30 = vpop.xlane.xlu1 %1303 }
0x1834   : > { %951 = vst.msk [vmem:[%s5228_s28] sm:$0xff] %vm950_vm4, %v949_v7  ;;  %v1305_v31 = vadd.f32 %v5220_v15, %v1304_v30  ;;  %v1659_v33 = vsel %vm529_vm0, %v1657_v29, 0.0 }
0x1835   : > { %1660 = vadd.xlane.f32.xlu1 %v1659_v33 }
0x1836   : > { %v1306_v0 = vmax.f32 %v1305_v31, 0.0 }
0x1837   : > { %v3436_v8 = vpop.permute.xlu1 %3435 }
0x1838   : > { %3687 = vst.msk [vmem:[%s5228_s28 + $0x8] sm:$0xff] %vm950_vm4, %v1306_v0  ;;  %v3438_v9 = vmul.f32 %v4374_v47, %v3436_v8 }
0x183a   : > { %v3439_v2 = vmul.f32 %v3438_v9, %v932_v50 }
0x1846   : > { %2013 = vrot.lane.b32.xlu1 %v2011_v32, %s4476_s20 }
0x184a   : > { %2370 = vrot.lane.b32.xlu1 %v2368_v62, %s4476_s20 }
0x184e   : > { %2727 = vrot.lane.b32.xlu1 %v2725_v4, %s4476_s20 }
0x1852   : > { %3084 = vrot.lane.b32.xlu1 %v3082_v35, %s4476_s20 }
0x1856   : > { %3441 = vrot.lane.b32.xlu1 %v3439_v2, %s4476_s20 }
0x18be   : > { %v1661_v59 = vpop.xlane.xlu1 %1660 }
0x18bf   : > { %v1662_v3 = vadd.f32 %v5220_v15, %v1661_v59 }
0x18c1   : > { %v1663_v1 = vmax.f32 %v1662_v3, 0.0 }
0x18c2   : > { %v2014_v51 = vpop.permute.xlu1 %2013 }
0x18c3   : > { %3696 = vst.msk [vmem:[%s5228_s28 + $0x10] sm:$0xff] %vm950_vm4, %v1663_v1  ;;  %v2016_v38 = vsel %vm529_vm0, %v2014_v51, 0.0 }
0x18c4   : > { %2017 = vadd.xlane.f32.xlu0 %v2016_v38 }
0x18c6   : > { %v2371_v5 = vpop.permute.xlu1 %2370 }
0x18c7   : > { %v2373_v43 = vsel %vm529_vm0, %v2371_v5, 0.0 }
0x18c8   : > { %2374 = vadd.xlane.f32.xlu1 %v2373_v43 }
0x18ca   : > { %v2728_v6 = vpop.permute.xlu1 %2727 }
0x18cb   : > { %v2730_v11 = vsel %vm529_vm0, %v2728_v6, 0.0 }
0x18cc   : > { %2731 = vadd.xlane.f32.xlu0 %v2730_v11 }
0x18ce   : > { %v3085_v12 = vpop.permute.xlu1 %3084 }
0x18cf   : > { %v3087_v13 = vsel %vm529_vm0, %v3085_v12, 0.0 }
0x18d0   : > { %3088 = vadd.xlane.f32.xlu0 %v3087_v13 }
0x18d2   : > { %v3442_v14 = vpop.permute.xlu1 %3441 }
0x18d3   : > { %v3444_v16 = vsel %vm529_vm0, %v3442_v14, 0.0 }
0x18d9   : > { %3459 = vrot.lane.b32.xlu1 %v3438_v9, %s4476_s20 }
0x18e6   : > { %3454 = vrot.lane.b32.xlu0 %v5187_v17, %s4477_s12 }
0x1905   : > { %3445 = vadd.xlane.f32.xlu0 %v3444_v16 }
0x191b   : > { %3464 = vrot.lane.b32.xlu0 %v3432_v60, %s4477_s12 }
0x194d   : > { %v2018_v18 = vpop.xlane.xlu0 %2017 }
0x194e   : > { %v2019_v19 = vadd.f32 %v5220_v15, %v2018_v18 }
0x1950   : > { %v2020_v20 = vmax.f32 %v2019_v19, 0.0 }
0x1951   : > { %v2375_v21 = vpop.xlane.xlu1 %2374 }
0x1952   : > { %3705 = vst.msk [vmem:[%s5228_s28 + $0x18] sm:$0xff] %vm950_vm4, %v2020_v20  ;;  %v2376_v23 = vadd.f32 %v5220_v15, %v2375_v21 }
0x1954   : > { %v2377_v24 = vmax.f32 %v2376_v23, 0.0 }
0x1955   : > { %v2732_v25 = vpop.xlane.xlu0 %2731  ;;  %v3460_v26 = vpop.permute.xlu1 %3459 }
0x1956   : > { %3714 = vst.msk [vmem:[%s5228_s28 + $0x20] sm:$0xff] %vm950_vm4, %v2377_v24  ;;  %v2733_v17 = vadd.f32 %v5220_v15, %v2732_v25 }
0x1957   : > { %3462 = vst.msk [vmem:[#allocation4] sm:$0xff] %vm529_vm0, %v3460_v26 }
0x1958   : > { %v2734_v34 = vmax.f32 %v2733_v17, 0.0 }
0x1959   : > { %v3089_v36 = vpop.xlane.xlu0 %3088 }
0x195a   : > { %3723 = vst.msk [vmem:[%s5228_s28 + $0x28] sm:$0xff] %vm950_vm4, %v2734_v34  ;;  %v3090_v37 = vadd.f32 %v5220_v15, %v3089_v36 }
0x195c   : > { %v3091_v10 = vmax.f32 %v3090_v37, 0.0 }
0x195d   : > { %v3455_v39 = vpop.permute.xlu0 %3454 }
0x195e   : > { %3732 = vst.msk [vmem:[%s5228_s28 + $0x30] sm:$0xff] %vm950_vm4, %v3091_v10 }
0x195f   : > { %3457 = vst.msk [vmem:[#allocation3] sm:$0xff] %vm529_vm0, %v3455_v39 }
0x198e   : > { %v3446_v40 = vpop.xlane.xlu0 %3445 }
0x198f   : > { %v3447_v41 = vadd.f32 %v5220_v15, %v3446_v40 }
0x1991   : > { %v3448_v42 = vmax.f32 %v3447_v41, 0.0 }
0x1992   : > { %v3465_v44 = vpop.permute.xlu0 %3464 }
0x1993   : > { %3741 = vst.msk [vmem:[%s5228_s28 + $0x38] sm:$0xff] %vm950_vm4, %v3448_v42 }
0x1994   : > { %3467 = vst.msk [vmem:[#allocation5] sm:$0xff] %vm529_vm0, %v3465_v44 }
0x1995 PF: > { %s22_s14 = sadd.s32 1, %s4470_s14   ;;  %s5304_s30 = smov %s4454_s10 }
0x1996   : > { %p19_p7 = scmp.ge.s32.totalorder %s22_s14, 5   ;;  %s5305_s10 = smov %s4458_s11 }
0x1997   : > { %s5306_s11 = smov %s4577_s21  ;;  %s5307_s12 = smov %s4466_s13 }
0x1998   : > { %s5308_s13 = smov %s5310_s16  ;;  %21 = sbr.rel (!%p19_p7) target bundleno = 4 (0x4), region = 138 }
0x199d   :  { %3498 = vsyncpa [#allocation7], 1 }
0x199e   :  { %3500 = vsyncpa [#allocation7 + $0x1], 1 }

</bundles_post_ra>
